<compile_context>
chip_gen: v7x
topology: tpu7x:2x2x1
jax: 0.10.0
libtpu: 0.0.40
codegen_flags: <defaults>
</compile_context>

<pallas_src>
import functools

import jax
import jax.numpy as jnp
import numpy as np
from jax import lax
from jax.experimental import pallas as pl
from jax.experimental.pallas import tpu as pltpu

KH = KW = 7
PAD = 3


def spatial_attn_kernel(p_ref, x_ref, o_ref, red_ref, pad_ref, *, H, W, C, ct, needs_mask):
    """Grid = (batch groups [parallel], channel tiles [arbitrary reduction]).

    p_ref:   SMEM (99,) f32              [avg weights * 1/C (49), max weights (49), bias (1)]
    x_ref:   VMEM (Bt, ct, H*W) x.dtype  lane-dense channel tile of Bt batch elements
    o_ref:   VMEM (Bt, 1, H*W)  x.dtype
    red_ref: VMEM (Bt, 2, H*W)  f32      running [channel-sum, channel-max]
    pad_ref: VMEM (Bt, 2, H*W + 2*(PAD*W + PAD)) f32  flat zero-padded reduced maps
    """
    Bt = x_ref.shape[0]
    HW = H * W
    DOFF = PAD * W + PAD                                   # data offset in the flat padded map
    c_idx = pl.program_id(1)

    # ---- lane-dense, vectorized channel reduction over this tile ----
    xt = x_ref[...].astype(jnp.float32)                    # (Bt, ct, HW)
    if needs_mask:                                         # last tile may run past C
        ch = c_idx * ct + lax.broadcasted_iota(jnp.int32, xt.shape, 1)
        valid = ch < C
        x_sum_in = jnp.where(valid, xt, 0.0)
        x_max_in = jnp.where(valid, xt, -jnp.inf)
    else:
        x_sum_in = xt
        x_max_in = xt
    tile_sum = jnp.sum(x_sum_in, axis=1)                   # (Bt, HW)
    tile_max = jnp.max(x_max_in, axis=1)                   # (Bt, HW)

    @pl.when(c_idx == 0)
    def _():
        red_ref[:, 0, :] = tile_sum
        red_ref[:, 1, :] = tile_max
        # Zero only the two 3-row pad bands; the interior is fully overwritten in the finalize.
        zband = jnp.zeros((Bt, 2, DOFF), jnp.float32)
        pad_ref[:, :, 0:DOFF] = zband
        pad_ref[:, :, DOFF + HW:] = zband

    @pl.when(c_idx != 0)
    def _():
        red_ref[:, 0, :] = red_ref[:, 0, :] + tile_sum
        red_ref[:, 1, :] = jnp.maximum(red_ref[:, 1, :], tile_max)

    # ---- finalize: 7x7 conv over the [mean, max] maps + bias + sigmoid, all lane-dense ----
    @pl.when(c_idx == pl.num_programs(1) - 1)
    def _():
        pad_ref[:, :, DOFF:DOFF + HW] = red_ref[...]       # single contiguous interior fill

        # Column index of every flat output pixel (masks taps that would wrap across rows).
        cols = lax.broadcasted_iota(jnp.int32, (Bt, HW), 1) % W

        acc = jnp.full((Bt, HW), p_ref[2 * KH * KW], jnp.float32)   # start from the bias
        for kw in range(KW):
            part = jnp.zeros((Bt, HW), jnp.float32)
            for kh in range(KH):
                off = kh * W + kw                          # flat shift of this tap
                wa = p_ref[kh * KW + kw]                   # avg-branch tap (pre-scaled by 1/C)
                wm = p_ref[KH * KW + kh * KW + kw]         # max-branch tap
                part = part + wa * pad_ref[:, 0, off:off + HW] + wm * pad_ref[:, 1, off:off + HW]
            lo = PAD - kw                                   # column validity shared by all kh
            col_ok = (cols >= lo) & (cols < W + lo)
            acc = acc + jnp.where(col_ok, part, 0.0)

        o_ref[:, 0, :] = jax.nn.sigmoid(acc).astype(o_ref.dtype)


def _vmem_capacity_bytes():
    try:
        return int(pltpu.get_tpu_info().vmem_capacity_bytes)
    except Exception:
        return 64 * 1024 * 1024                            # conservative (v7x-sized) fallback


def _choose_channel_tile(C, HW, itemsize, target_block_bytes):
    """Largest channel tile that keeps one input block under the byte target, sublane-aligned."""
    cap = max(1, int(target_block_bytes) // max(1, HW * itemsize))
    if cap >= C:
        return C                                           # whole channel axis in one tile
    return min(max(8, (cap // 8) * 8), C)


def _choose_batch_tile(B, per_elem_bytes, target_block_bytes):
    """Largest divisor of B under the byte target that keeps >=2 parallel grid steps (v7x)."""
    min_parallel = 2 if B >= 2 else 1
    best = 1
    for bt in range(1, B + 1):
        if B % bt != 0 or B // bt < min_parallel:
            continue
        if bt * per_elem_bytes > target_block_bytes:
            continue
        best = bt
    return best


def spatial_attention(x, weight, bias):
    """x: (B, C, H, W); weight: (1, 2, 7, 7); bias: (1,) -> (B, 1, H, W) in x.dtype."""
    B, C, H, W = x.shape
    HW = H * W
    DOFF = PAD * W + PAD
    L = HW + 2 * DOFF
    itemsize = jnp.dtype(x.dtype).itemsize

    vmem_cap = _vmem_capacity_bytes()
    target_block_bytes = max(1 << 20, min(24 << 20, vmem_cap // 6))

    ct = _choose_channel_tile(C, HW, itemsize, target_block_bytes)
    cn = pl.cdiv(C, ct)
    needs_mask = (C % ct) != 0
    # Group batch elements only when the whole channel axis already fits in one block.
    # TODO(synk): for B == 1 on v7x a spatial (halo) split would be needed to occupy both cores.
    Bt = _choose_batch_tile(B, C * HW * itemsize, target_block_bytes) if cn == 1 else 1
    bn = B // Bt

    # Lane-dense view: free reshape of contiguous NCHW; DMA'd in the native dtype.
    x_flat = x.reshape(B, C, HW)

    # Fold 1/C of the channel mean into the avg-branch weights (f32, host side) and pack
    # [avg weights, max weights, bias] into one flat SMEM prefetch vector.
    w2 = weight.reshape(2, KH * KW).astype(jnp.float32)
    params = jnp.concatenate(
        [w2[0] * jnp.float32(1.0 / C), w2[1], bias.reshape(-1).astype(jnp.float32)])

    kernel = functools.partial(spatial_attn_kernel, H=H, W=W, C=C, ct=ct, needs_mask=needs_mask)

    cost = pl.CostEstimate(
        flops=2 * B * C * HW + (4 * KH * KW + 10) * B * HW,
        transcendentals=B * HW,
        bytes_accessed=B * C * HW * itemsize + B * HW * itemsize + int(params.size) * 4)

    grid_spec = pltpu.PrefetchScalarGridSpec(
        num_scalar_prefetch=1,                              # conv weights + bias live in SMEM
        grid=(bn, cn),                                      # batch groups (parallel), channel tiles
        in_specs=[pl.BlockSpec((Bt, ct, HW), lambda b, c, p: (b, c, 0))],
        out_specs=pl.BlockSpec((Bt, 1, HW), lambda b, c, p: (b, 0, 0)),
        scratch_shapes=[pltpu.VMEM((Bt, 2, HW), jnp.float32),
                        pltpu.VMEM((Bt, 2, L), jnp.float32)],
    )

    out_flat = pl.pallas_call(
        kernel,
        out_shape=jax.ShapeDtypeStruct((B, 1, HW), x.dtype),
        grid_spec=grid_spec,
        compiler_params=pltpu.CompilerParams(
            dimension_semantics=("parallel", "arbitrary"),
            vmem_limit_bytes=int(max(32 << 20, min(vmem_cap * 3 // 4, 112 << 20)))),
        cost_estimate=cost,
    )(params, x_flat)
    return out_flat.reshape(B, 1, H, W)


def ref_forward(x, weight, bias):
    """Pure-JAX reference matching the PyTorch forward."""
    avg = jnp.mean(x, axis=1, keepdims=True)
    mx = jnp.max(x, axis=1, keepdims=True)
    cat = jnp.concatenate([avg, mx], axis=1)
    conv = jax.lax.conv_general_dilated(
        cat, weight, window_strides=(1, 1), padding=((PAD, PAD), (PAD, PAD)),
        dimension_numbers=("NCHW", "OIHW", "NCHW"))
    return jax.nn.sigmoid(conv + bias.reshape(1, -1, 1, 1))


if __name__ == "__main__":
    key = jax.random.PRNGKey(0)
    kx, kw_key, kb_key = jax.random.split(key, 3)

    B, C, H, W = 2, 4, 16, 16
    x = jax.random.normal(kx, (B, C, H, W), dtype=jnp.float32)

    # Deterministic parameter init (Conv2d(2 -> 1, kernel_size=7) shapes).
    fan_in = 2 * KH * KW
    bound = 1.0 / np.sqrt(fan_in)
    weight = jax.random.uniform(kw_key, (1, 2, KH, KW), jnp.float32, -bound, bound)
    bias = jax.random.uniform(kb_key, (1,), jnp.float32, -bound, bound)

    out = jax.block_until_ready(spatial_attention(x, weight, bias))
    expected = jax.block_until_ready(ref_forward(x, weight, bias))

    np.testing.assert_allclose(np.asarray(out), np.asarray(expected), rtol=1e-5, atol=1e-5)
    assert out.shape == (B, 1, H, W)
    print("KERNEL_OK")
</pallas_src>

<mosaic_0001>
module attributes {stable_mosaic.version = 11 : i64} {
  func.func @spatial_attn_kernel(%arg0: i32, %arg1: i32, %arg2: memref<99xf32, #tpu.memory_space<smem>>, %arg3: memref<1x4x256xf32, #tpu.memory_space<vmem>>, %arg4: memref<1x1x256xf32, #tpu.memory_space<vmem>>, %arg5: memref<1x2x256xf32, #tpu.memory_space<vmem>>, %arg6: memref<1x2x358xf32, #tpu.memory_space<vmem>>) attributes {dimension_semantics = [#tpu.dimension_semantics<parallel>, #tpu.dimension_semantics<arbitrary>], iteration_bounds = array<i64: 2, 1>, scalar_prefetch = 1 : i64, scratch_operands = 2 : i64, tpu.core_type = #tpu.core_type<tc>, window_params = [{transform_indices = @transform_0, window_bounds = array<i64: 1, 4, 256>}, {transform_indices = @transform_1, window_bounds = array<i64: 1, 1, 256>}]} {
    %c0 = arith.constant 0 : index
    %c0_0 = arith.constant 0 : index
    %c0_1 = arith.constant 0 : index
    %0 = vector.load %arg3[%c0, %c0_0, %c0_1] : memref<1x4x256xf32, #tpu.memory_space<vmem>>, vector<1x4x256xf32>
    %cst = arith.constant dense<0.000000e+00> : vector<1x256xf32>
    %1 = vector.multi_reduction <add>, %0, %cst [1] : vector<1x4x256xf32> to vector<1x256xf32>
    %cst_2 = arith.constant dense<0xFF800000> : vector<1x256xf32>
    %2 = vector.multi_reduction <maximumf>, %0, %cst_2 [1] : vector<1x4x256xf32> to vector<1x256xf32>
    %c0_i32 = arith.constant 0 : i32
    %3 = arith.cmpi eq, %arg1, %c0_i32 : i32
    %4 = arith.extui %3 : i1 to i32
    %c0_i32_3 = arith.constant 0 : i32
    %5 = arith.cmpi ne, %4, %c0_i32_3 : i32
    scf.if %5 {
      %c0_8 = arith.constant 0 : index
      %c0_9 = arith.constant 0 : index
      %c0_10 = arith.constant 0 : index
      %12 = vector.load %arg5[%c0_8, %c0_9, %c0_10] : memref<1x2x256xf32, #tpu.memory_space<vmem>>, vector<1x1x256xf32>
      %13 = vector.shape_cast %12 : vector<1x1x256xf32> to vector<1x256xf32>
      %14 = vector.shape_cast %1 : vector<1x256xf32> to vector<1x1x256xf32>
      tpu.vector_store %arg5[%c0_8, %c0_9, %c0_10], %14 {strides = array<i32>} : memref<1x2x256xf32, #tpu.memory_space<vmem>>, vector<1x1x256xf32>,
      %c0_11 = arith.constant 0 : index
      %c1 = arith.constant 1 : index
      %c0_12 = arith.constant 0 : index
      %15 = vector.load %arg5[%c0_11, %c1, %c0_12] : memref<1x2x256xf32, #tpu.memory_space<vmem>>, vector<1x1x256xf32>
      %16 = vector.shape_cast %15 : vector<1x1x256xf32> to vector<1x256xf32>
      %17 = vector.shape_cast %2 : vector<1x256xf32> to vector<1x1x256xf32>
      tpu.vector_store %arg5[%c0_11, %c1, %c0_12], %17 {strides = array<i32>} : memref<1x2x256xf32, #tpu.memory_space<vmem>>, vector<1x1x256xf32>,
      %cst_13 = arith.constant 0.000000e+00 : f32
      %18 = vector.broadcast %cst_13 : f32 to vector<1x2x51xf32>
      %c0_14 = arith.constant 0 : index
      %c0_15 = arith.constant 0 : index
      %c0_16 = arith.constant 0 : index
      %19 = vector.load %arg6[%c0_14, %c0_15, %c0_16] : memref<1x2x358xf32, #tpu.memory_space<vmem>>, vector<1x2x51xf32>
      tpu.vector_store %arg6[%c0_14, %c0_15, %c0_16], %18 {strides = array<i32>} : memref<1x2x358xf32, #tpu.memory_space<vmem>>, vector<1x2x51xf32>,
      %c0_17 = arith.constant 0 : index
      %c0_18 = arith.constant 0 : index
      %c307 = arith.constant 307 : index
      %20 = vector.load %arg6[%c0_17, %c0_18, %c307] : memref<1x2x358xf32, #tpu.memory_space<vmem>>, vector<1x2x51xf32>
      tpu.vector_store %arg6[%c0_17, %c0_18, %c307], %18 {strides = array<i32>} : memref<1x2x358xf32, #tpu.memory_space<vmem>>, vector<1x2x51xf32>,
    } else {
    }
    %c0_i32_4 = arith.constant 0 : i32
    %6 = arith.cmpi ne, %arg1, %c0_i32_4 : i32
    %7 = arith.extui %6 : i1 to i32
    %c0_i32_5 = arith.constant 0 : i32
    %8 = arith.cmpi ne, %7, %c0_i32_5 : i32
    scf.if %8 {
      %c0_8 = arith.constant 0 : index
      %c0_9 = arith.constant 0 : index
      %c0_10 = arith.constant 0 : index
      %12 = vector.load %arg5[%c0_8, %c0_9, %c0_10] : memref<1x2x256xf32, #tpu.memory_space<vmem>>, vector<1x1x256xf32>
      %13 = vector.shape_cast %12 : vector<1x1x256xf32> to vector<1x256xf32>
      %14 = arith.addf %13, %1 : vector<1x256xf32>
      %c0_11 = arith.constant 0 : index
      %c0_12 = arith.constant 0 : index
      %c0_13 = arith.constant 0 : index
      %15 = vector.load %arg5[%c0_11, %c0_12, %c0_13] : memref<1x2x256xf32, #tpu.memory_space<vmem>>, vector<1x1x256xf32>
      %16 = vector.shape_cast %15 : vector<1x1x256xf32> to vector<1x256xf32>
      %17 = vector.shape_cast %14 : vector<1x256xf32> to vector<1x1x256xf32>
      tpu.vector_store %arg5[%c0_11, %c0_12, %c0_13], %17 {strides = array<i32>} : memref<1x2x256xf32, #tpu.memory_space<vmem>>, vector<1x1x256xf32>,
      %c0_14 = arith.constant 0 : index
      %c1 = arith.constant 1 : index
      %c0_15 = arith.constant 0 : index
      %18 = vector.load %arg5[%c0_14, %c1, %c0_15] : memref<1x2x256xf32, #tpu.memory_space<vmem>>, vector<1x1x256xf32>
      %19 = vector.shape_cast %18 : vector<1x1x256xf32> to vector<1x256xf32>
      %20 = arith.maximumf %19, %2 : vector<1x256xf32>
      %c0_16 = arith.constant 0 : index
      %c1_17 = arith.constant 1 : index
      %c0_18 = arith.constant 0 : index
      %21 = vector.load %arg5[%c0_16, %c1_17, %c0_18] : memref<1x2x256xf32, #tpu.memory_space<vmem>>, vector<1x1x256xf32>
      %22 = vector.shape_cast %21 : vector<1x1x256xf32> to vector<1x256xf32>
      %23 = vector.shape_cast %20 : vector<1x256xf32> to vector<1x1x256xf32>
      tpu.vector_store %arg5[%c0_16, %c1_17, %c0_18], %23 {strides = array<i32>} : memref<1x2x256xf32, #tpu.memory_space<vmem>>, vector<1x1x256xf32>,
    } else {
    }
    %c0_i32_6 = arith.constant 0 : i32
    %9 = arith.cmpi eq, %arg1, %c0_i32_6 : i32
    %10 = arith.extui %9 : i1 to i32
    %c0_i32_7 = arith.constant 0 : i32
    %11 = arith.cmpi ne, %10, %c0_i32_7 : i32
    scf.if %11 {
      %c0_8 = arith.constant 0 : index
      %c0_9 = arith.constant 0 : index
      %c0_10 = arith.constant 0 : index
      %12 = vector.load %arg5[%c0_8, %c0_9, %c0_10] : memref<1x2x256xf32, #tpu.memory_space<vmem>>, vector<1x2x256xf32>
      %c0_11 = arith.constant 0 : index
      %c0_12 = arith.constant 0 : index
      %c51 = arith.constant 51 : index
      %13 = vector.load %arg6[%c0_11, %c0_12, %c51] : memref<1x2x358xf32, #tpu.memory_space<vmem>>, vector<1x2x256xf32>
      tpu.vector_store %arg6[%c0_11, %c0_12, %c51], %12 {strides = array<i32>} : memref<1x2x358xf32, #tpu.memory_space<vmem>>, vector<1x2x256xf32>,
      %14 = tpu.iota {dimensions = array<i32: 1>} : vector<1x256xi32>
      %c16_i32 = arith.constant 16 : i32
      %c0_i32_13 = arith.constant 0 : i32
      %15 = arith.cmpi eq, %c16_i32, %c0_i32_13 : i32
      %c1_i32 = arith.constant 1 : i32
      %16 = arith.select %15, %c1_i32, %c16_i32 : i32
      %17 = vector.broadcast %16 : i32 to vector<1x256xi32>
      %18 = arith.remsi %14, %17 : vector<1x256xi32>
      %c0_i32_14 = arith.constant 0 : i32
      %19 = vector.broadcast %c0_i32_14 : i32 to vector<1x256xi32>
      %20 = arith.cmpi ne, %18, %19 : vector<1x256xi32>
      %c0_i32_15 = arith.constant 0 : i32
      %21 = vector.broadcast %c0_i32_15 : i32 to vector<1x256xi32>
      %22 = arith.cmpi slt, %18, %21 : vector<1x256xi32>
      %c0_i32_16 = arith.constant 0 : i32
      %23 = arith.cmpi slt, %16, %c0_i32_16 : i32
      %24 = vector.broadcast %23 : i1 to vector<1x256xi1>
      %25 = vector.broadcast %24 : vector<1x256xi1> to vector<1x256xi1>
      %26 = arith.xori %22, %25 : vector<1x256xi1>
      %27 = arith.andi %26, %20 : vector<1x256xi1>
      %28 = vector.broadcast %16 : i32 to vector<1x256xi32>
      %29 = arith.addi %18, %28 : vector<1x256xi32>
      %30 = arith.select %27, %29, %18 : vector<1x256xi1>, vector<1x256xi32>
      %c98 = arith.constant 98 : index
      %31 = memref.load %arg2[%c98] : memref<99xf32, #tpu.memory_space<smem>>
      %32 = vector.broadcast %31 : f32 to vector<1x256xf32>
      %cst_17 = arith.constant 0.000000e+00 : f32
      %33 = vector.broadcast %cst_17 : f32 to vector<1x256xf32>
      %c0_18 = arith.constant 0 : index
      %34 = memref.load %arg2[%c0_18] : memref<99xf32, #tpu.memory_space<smem>>
      %c49 = arith.constant 49 : index
      %35 = memref.load %arg2[%c49] : memref<99xf32, #tpu.memory_space<smem>>
      %c0_19 = arith.constant 0 : index
      %c0_20 = arith.constant 0 : index
      %c0_21 = arith.constant 0 : index
      %36 = vector.load %arg6[%c0_19, %c0_20, %c0_21] : memref<1x2x358xf32, #tpu.memory_space<vmem>>, vector<1x1x256xf32>
      %37 = vector.shape_cast %36 : vector<1x1x256xf32> to vector<1x256xf32>
      %38 = vector.broadcast %34 : f32 to vector<1x256xf32>
      %39 = arith.mulf %38, %37 : vector<1x256xf32>
      %40 = arith.addf %33, %39 : vector<1x256xf32>
      %c0_22 = arith.constant 0 : index
      %c1 = arith.constant 1 : index
      %c0_23 = arith.constant 0 : index
      %41 = vector.load %arg6[%c0_22, %c1, %c0_23] : memref<1x2x358xf32, #tpu.memory_space<vmem>>, vector<1x1x256xf32>
      %42 = vector.shape_cast %41 : vector<1x1x256xf32> to vector<1x256xf32>
      %43 = vector.broadcast %35 : f32 to vector<1x256xf32>
      %44 = arith.mulf %43, %42 : vector<1x256xf32>
      %45 = arith.addf %40, %44 : vector<1x256xf32>
      %c7 = arith.constant 7 : index
      %46 = memref.load %arg2[%c7] : memref<99xf32, #tpu.memory_space<smem>>
      %c56 = arith.constant 56 : index
      %47 = memref.load %arg2[%c56] : memref<99xf32, #tpu.memory_space<smem>>
      %c0_24 = arith.constant 0 : index
      %c0_25 = arith.constant 0 : index
      %c16 = arith.constant 16 : index
      %48 = vector.load %arg6[%c0_24, %c0_25, %c16] : memref<1x2x358xf32, #tpu.memory_space<vmem>>, vector<1x1x256xf32>
      %49 = vector.shape_cast %48 : vector<1x1x256xf32> to vector<1x256xf32>
      %50 = vector.broadcast %46 : f32 to vector<1x256xf32>
      %51 = arith.mulf %50, %49 : vector<1x256xf32>
      %52 = arith.addf %45, %51 : vector<1x256xf32>
      %c0_26 = arith.constant 0 : index
      %c1_27 = arith.constant 1 : index
      %c16_28 = arith.constant 16 : index
      %53 = vector.load %arg6[%c0_26, %c1_27, %c16_28] : memref<1x2x358xf32, #tpu.memory_space<vmem>>, vector<1x1x256xf32>
      %54 = vector.shape_cast %53 : vector<1x1x256xf32> to vector<1x256xf32>
      %55 = vector.broadcast %47 : f32 to vector<1x256xf32>
      %56 = arith.mulf %55, %54 : vector<1x256xf32>
      %57 = arith.addf %52, %56 : vector<1x256xf32>
      %c14 = arith.constant 14 : index
      %58 = memref.load %arg2[%c14] : memref<99xf32, #tpu.memory_space<smem>>
      %c63 = arith.constant 63 : index
      %59 = memref.load %arg2[%c63] : memref<99xf32, #tpu.memory_space<smem>>
      %c0_29 = arith.constant 0 : index
      %c0_30 = arith.constant 0 : index
      %c32 = arith.constant 32 : index
      %60 = vector.load %arg6[%c0_29, %c0_30, %c32] : memref<1x2x358xf32, #tpu.memory_space<vmem>>, vector<1x1x256xf32>
      %61 = vector.shape_cast %60 : vector<1x1x256xf32> to vector<1x256xf32>
      %62 = vector.broadcast %58 : f32 to vector<1x256xf32>
      %63 = arith.mulf %62, %61 : vector<1x256xf32>
      %64 = arith.addf %57, %63 : vector<1x256xf32>
      %c0_31 = arith.constant 0 : index
      %c1_32 = arith.constant 1 : index
      %c32_33 = arith.constant 32 : index
      %65 = vector.load %arg6[%c0_31, %c1_32, %c32_33] : memref<1x2x358xf32, #tpu.memory_space<vmem>>, vector<1x1x256xf32>
      %66 = vector.shape_cast %65 : vector<1x1x256xf32> to vector<1x256xf32>
      %67 = vector.broadcast %59 : f32 to vector<1x256xf32>
      %68 = arith.mulf %67, %66 : vector<1x256xf32>
      %69 = arith.addf %64, %68 : vector<1x256xf32>
      %c21 = arith.constant 21 : index
      %70 = memref.load %arg2[%c21] : memref<99xf32, #tpu.memory_space<smem>>
      %c70 = arith.constant 70 : index
      %71 = memref.load %arg2[%c70] : memref<99xf32, #tpu.memory_space<smem>>
      %c0_34 = arith.constant 0 : index
      %c0_35 = arith.constant 0 : index
      %c48 = arith.constant 48 : index
      %72 = vector.load %arg6[%c0_34, %c0_35, %c48] : memref<1x2x358xf32, #tpu.memory_space<vmem>>, vector<1x1x256xf32>
      %73 = vector.shape_cast %72 : vector<1x1x256xf32> to vector<1x256xf32>
      %74 = vector.broadcast %70 : f32 to vector<1x256xf32>
      %75 = arith.mulf %74, %73 : vector<1x256xf32>
      %76 = arith.addf %69, %75 : vector<1x256xf32>
      %c0_36 = arith.constant 0 : index
      %c1_37 = arith.constant 1 : index
      %c48_38 = arith.constant 48 : index
      %77 = vector.load %arg6[%c0_36, %c1_37, %c48_38] : memref<1x2x358xf32, #tpu.memory_space<vmem>>, vector<1x1x256xf32>
      %78 = vector.shape_cast %77 : vector<1x1x256xf32> to vector<1x256xf32>
      %79 = vector.broadcast %71 : f32 to vector<1x256xf32>
      %80 = arith.mulf %79, %78 : vector<1x256xf32>
      %81 = arith.addf %76, %80 : vector<1x256xf32>
      %c28 = arith.constant 28 : index
      %82 = memref.load %arg2[%c28] : memref<99xf32, #tpu.memory_space<smem>>
      %c77 = arith.constant 77 : index
      %83 = memref.load %arg2[%c77] : memref<99xf32, #tpu.memory_space<smem>>
      %c0_39 = arith.constant 0 : index
      %c0_40 = arith.constant 0 : index
      %c64 = arith.constant 64 : index
      %84 = vector.load %arg6[%c0_39, %c0_40, %c64] : memref<1x2x358xf32, #tpu.memory_space<vmem>>, vector<1x1x256xf32>
      %85 = vector.shape_cast %84 : vector<1x1x256xf32> to vector<1x256xf32>
      %86 = vector.broadcast %82 : f32 to vector<1x256xf32>
      %87 = arith.mulf %86, %85 : vector<1x256xf32>
      %88 = arith.addf %81, %87 : vector<1x256xf32>
      %c0_41 = arith.constant 0 : index
      %c1_42 = arith.constant 1 : index
      %c64_43 = arith.constant 64 : index
      %89 = vector.load %arg6[%c0_41, %c1_42, %c64_43] : memref<1x2x358xf32, #tpu.memory_space<vmem>>, vector<1x1x256xf32>
      %90 = vector.shape_cast %89 : vector<1x1x256xf32> to vector<1x256xf32>
      %91 = vector.broadcast %83 : f32 to vector<1x256xf32>
      %92 = arith.mulf %91, %90 : vector<1x256xf32>
      %93 = arith.addf %88, %92 : vector<1x256xf32>
      %c35 = arith.constant 35 : index
      %94 = memref.load %arg2[%c35] : memref<99xf32, #tpu.memory_space<smem>>
      %c84 = arith.constant 84 : index
      %95 = memref.load %arg2[%c84] : memref<99xf32, #tpu.memory_space<smem>>
      %c0_44 = arith.constant 0 : index
      %c0_45 = arith.constant 0 : index
      %c80 = arith.constant 80 : index
      %96 = vector.load %arg6[%c0_44, %c0_45, %c80] : memref<1x2x358xf32, #tpu.memory_space<vmem>>, vector<1x1x256xf32>
      %97 = vector.shape_cast %96 : vector<1x1x256xf32> to vector<1x256xf32>
      %98 = vector.broadcast %94 : f32 to vector<1x256xf32>
      %99 = arith.mulf %98, %97 : vector<1x256xf32>
      %100 = arith.addf %93, %99 : vector<1x256xf32>
      %c0_46 = arith.constant 0 : index
      %c1_47 = arith.constant 1 : index
      %c80_48 = arith.constant 80 : index
      %101 = vector.load %arg6[%c0_46, %c1_47, %c80_48] : memref<1x2x358xf32, #tpu.memory_space<vmem>>, vector<1x1x256xf32>
      %102 = vector.shape_cast %101 : vector<1x1x256xf32> to vector<1x256xf32>
      %103 = vector.broadcast %95 : f32 to vector<1x256xf32>
      %104 = arith.mulf %103, %102 : vector<1x256xf32>
      %105 = arith.addf %100, %104 : vector<1x256xf32>
      %c42 = arith.constant 42 : index
      %106 = memref.load %arg2[%c42] : memref<99xf32, #tpu.memory_space<smem>>
      %c91 = arith.constant 91 : index
      %107 = memref.load %arg2[%c91] : memref<99xf32, #tpu.memory_space<smem>>
      %c0_49 = arith.constant 0 : index
      %c0_50 = arith.constant 0 : index
      %c96 = arith.constant 96 : index
      %108 = vector.load %arg6[%c0_49, %c0_50, %c96] : memref<1x2x358xf32, #tpu.memory_space<vmem>>, vector<1x1x256xf32>
      %109 = vector.shape_cast %108 : vector<1x1x256xf32> to vector<1x256xf32>
      %110 = vector.broadcast %106 : f32 to vector<1x256xf32>
      %111 = arith.mulf %110, %109 : vector<1x256xf32>
      %112 = arith.addf %105, %111 : vector<1x256xf32>
      %c0_51 = arith.constant 0 : index
      %c1_52 = arith.constant 1 : index
      %c96_53 = arith.constant 96 : index
      %113 = vector.load %arg6[%c0_51, %c1_52, %c96_53] : memref<1x2x358xf32, #tpu.memory_space<vmem>>, vector<1x1x256xf32>
      %114 = vector.shape_cast %113 : vector<1x1x256xf32> to vector<1x256xf32>
      %115 = vector.broadcast %107 : f32 to vector<1x256xf32>
      %116 = arith.mulf %115, %114 : vector<1x256xf32>
      %117 = arith.addf %112, %116 : vector<1x256xf32>
      %c3_i32 = arith.constant 3 : i32
      %118 = vector.broadcast %c3_i32 : i32 to vector<1x256xi32>
      %119 = arith.cmpi sge, %30, %118 : vector<1x256xi32>
      %c19_i32 = arith.constant 19 : i32
      %120 = vector.broadcast %c19_i32 : i32 to vector<1x256xi32>
      %121 = arith.cmpi slt, %30, %120 : vector<1x256xi32>
      %122 = arith.andi %119, %121 : vector<1x256xi1>
      %cst_54 = arith.constant 0.000000e+00 : f32
      %123 = vector.broadcast %cst_54 : f32 to vector<1x256xf32>
      %124 = arith.select %122, %117, %123 : vector<1x256xi1>, vector<1x256xf32>
      %125 = arith.addf %32, %124 : vector<1x256xf32>
      %cst_55 = arith.constant 0.000000e+00 : f32
      %126 = vector.broadcast %cst_55 : f32 to vector<1x256xf32>
      %c1_56 = arith.constant 1 : index
      %127 = memref.load %arg2[%c1_56] : memref<99xf32, #tpu.memory_space<smem>>
      %c50 = arith.constant 50 : index
      %128 = memref.load %arg2[%c50] : memref<99xf32, #tpu.memory_space<smem>>
      %c0_57 = arith.constant 0 : index
      %c0_58 = arith.constant 0 : index
      %c1_59 = arith.constant 1 : index
      %129 = vector.load %arg6[%c0_57, %c0_58, %c1_59] : memref<1x2x358xf32, #tpu.memory_space<vmem>>, vector<1x1x256xf32>
      %130 = vector.shape_cast %129 : vector<1x1x256xf32> to vector<1x256xf32>
      %131 = vector.broadcast %127 : f32 to vector<1x256xf32>
      %132 = arith.mulf %131, %130 : vector<1x256xf32>
      %133 = arith.addf %126, %132 : vector<1x256xf32>
      %c0_60 = arith.constant 0 : index
      %c1_61 = arith.constant 1 : index
      %c1_62 = arith.constant 1 : index
      %134 = vector.load %arg6[%c0_60, %c1_61, %c1_62] : memref<1x2x358xf32, #tpu.memory_space<vmem>>, vector<1x1x256xf32>
      %135 = vector.shape_cast %134 : vector<1x1x256xf32> to vector<1x256xf32>
      %136 = vector.broadcast %128 : f32 to vector<1x256xf32>
      %137 = arith.mulf %136, %135 : vector<1x256xf32>
      %138 = arith.addf %133, %137 : vector<1x256xf32>
      %c8 = arith.constant 8 : index
      %139 = memref.load %arg2[%c8] : memref<99xf32, #tpu.memory_space<smem>>
      %c57 = arith.constant 57 : index
      %140 = memref.load %arg2[%c57] : memref<99xf32, #tpu.memory_space<smem>>
      %c0_63 = arith.constant 0 : index
      %c0_64 = arith.constant 0 : index
      %c17 = arith.constant 17 : index
      %141 = vector.load %arg6[%c0_63, %c0_64, %c17] : memref<1x2x358xf32, #tpu.memory_space<vmem>>, vector<1x1x256xf32>
      %142 = vector.shape_cast %141 : vector<1x1x256xf32> to vector<1x256xf32>
      %143 = vector.broadcast %139 : f32 to vector<1x256xf32>
      %144 = arith.mulf %143, %142 : vector<1x256xf32>
      %145 = arith.addf %138, %144 : vector<1x256xf32>
      %c0_65 = arith.constant 0 : index
      %c1_66 = arith.constant 1 : index
      %c17_67 = arith.constant 17 : index
      %146 = vector.load %arg6[%c0_65, %c1_66, %c17_67] : memref<1x2x358xf32, #tpu.memory_space<vmem>>, vector<1x1x256xf32>
      %147 = vector.shape_cast %146 : vector<1x1x256xf32> to vector<1x256xf32>
      %148 = vector.broadcast %140 : f32 to vector<1x256xf32>
      %149 = arith.mulf %148, %147 : vector<1x256xf32>
      %150 = arith.addf %145, %149 : vector<1x256xf32>
      %c15 = arith.constant 15 : index
      %151 = memref.load %arg2[%c15] : memref<99xf32, #tpu.memory_space<smem>>
      %c64_68 = arith.constant 64 : index
      %152 = memref.load %arg2[%c64_68] : memref<99xf32, #tpu.memory_space<smem>>
      %c0_69 = arith.constant 0 : index
      %c0_70 = arith.constant 0 : index
      %c33 = arith.constant 33 : index
      %153 = vector.load %arg6[%c0_69, %c0_70, %c33] : memref<1x2x358xf32, #tpu.memory_space<vmem>>, vector<1x1x256xf32>
      %154 = vector.shape_cast %153 : vector<1x1x256xf32> to vector<1x256xf32>
      %155 = vector.broadcast %151 : f32 to vector<1x256xf32>
      %156 = arith.mulf %155, %154 : vector<1x256xf32>
      %157 = arith.addf %150, %156 : vector<1x256xf32>
      %c0_71 = arith.constant 0 : index
      %c1_72 = arith.constant 1 : index
      %c33_73 = arith.constant 33 : index
      %158 = vector.load %arg6[%c0_71, %c1_72, %c33_73] : memref<1x2x358xf32, #tpu.memory_space<vmem>>, vector<1x1x256xf32>
      %159 = vector.shape_cast %158 : vector<1x1x256xf32> to vector<1x256xf32>
      %160 = vector.broadcast %152 : f32 to vector<1x256xf32>
      %161 = arith.mulf %160, %159 : vector<1x256xf32>
      %162 = arith.addf %157, %161 : vector<1x256xf32>
      %c22 = arith.constant 22 : index
      %163 = memref.load %arg2[%c22] : memref<99xf32, #tpu.memory_space<smem>>
      %c71 = arith.constant 71 : index
      %164 = memref.load %arg2[%c71] : memref<99xf32, #tpu.memory_space<smem>>
      %c0_74 = arith.constant 0 : index
      %c0_75 = arith.constant 0 : index
      %c49_76 = arith.constant 49 : index
      %165 = vector.load %arg6[%c0_74, %c0_75, %c49_76] : memref<1x2x358xf32, #tpu.memory_space<vmem>>, vector<1x1x256xf32>
      %166 = vector.shape_cast %165 : vector<1x1x256xf32> to vector<1x256xf32>
      %167 = vector.broadcast %163 : f32 to vector<1x256xf32>
      %168 = arith.mulf %167, %166 : vector<1x256xf32>
      %169 = arith.addf %162, %168 : vector<1x256xf32>
      %c0_77 = arith.constant 0 : index
      %c1_78 = arith.constant 1 : index
      %c49_79 = arith.constant 49 : index
      %170 = vector.load %arg6[%c0_77, %c1_78, %c49_79] : memref<1x2x358xf32, #tpu.memory_space<vmem>>, vector<1x1x256xf32>
      %171 = vector.shape_cast %170 : vector<1x1x256xf32> to vector<1x256xf32>
      %172 = vector.broadcast %164 : f32 to vector<1x256xf32>
      %173 = arith.mulf %172, %171 : vector<1x256xf32>
      %174 = arith.addf %169, %173 : vector<1x256xf32>
      %c29 = arith.constant 29 : index
      %175 = memref.load %arg2[%c29] : memref<99xf32, #tpu.memory_space<smem>>
      %c78 = arith.constant 78 : index
      %176 = memref.load %arg2[%c78] : memref<99xf32, #tpu.memory_space<smem>>
      %c0_80 = arith.constant 0 : index
      %c0_81 = arith.constant 0 : index
      %c65 = arith.constant 65 : index
      %177 = vector.load %arg6[%c0_80, %c0_81, %c65] : memref<1x2x358xf32, #tpu.memory_space<vmem>>, vector<1x1x256xf32>
      %178 = vector.shape_cast %177 : vector<1x1x256xf32> to vector<1x256xf32>
      %179 = vector.broadcast %175 : f32 to vector<1x256xf32>
      %180 = arith.mulf %179, %178 : vector<1x256xf32>
      %181 = arith.addf %174, %180 : vector<1x256xf32>
      %c0_82 = arith.constant 0 : index
      %c1_83 = arith.constant 1 : index
      %c65_84 = arith.constant 65 : index
      %182 = vector.load %arg6[%c0_82, %c1_83, %c65_84] : memref<1x2x358xf32, #tpu.memory_space<vmem>>, vector<1x1x256xf32>
      %183 = vector.shape_cast %182 : vector<1x1x256xf32> to vector<1x256xf32>
      %184 = vector.broadcast %176 : f32 to vector<1x256xf32>
      %185 = arith.mulf %184, %183 : vector<1x256xf32>
      %186 = arith.addf %181, %185 : vector<1x256xf32>
      %c36 = arith.constant 36 : index
      %187 = memref.load %arg2[%c36] : memref<99xf32, #tpu.memory_space<smem>>
      %c85 = arith.constant 85 : index
      %188 = memref.load %arg2[%c85] : memref<99xf32, #tpu.memory_space<smem>>
      %c0_85 = arith.constant 0 : index
      %c0_86 = arith.constant 0 : index
      %c81 = arith.constant 81 : index
      %189 = vector.load %arg6[%c0_85, %c0_86, %c81] : memref<1x2x358xf32, #tpu.memory_space<vmem>>, vector<1x1x256xf32>
      %190 = vector.shape_cast %189 : vector<1x1x256xf32> to vector<1x256xf32>
      %191 = vector.broadcast %187 : f32 to vector<1x256xf32>
      %192 = arith.mulf %191, %190 : vector<1x256xf32>
      %193 = arith.addf %186, %192 : vector<1x256xf32>
      %c0_87 = arith.constant 0 : index
      %c1_88 = arith.constant 1 : index
      %c81_89 = arith.constant 81 : index
      %194 = vector.load %arg6[%c0_87, %c1_88, %c81_89] : memref<1x2x358xf32, #tpu.memory_space<vmem>>, vector<1x1x256xf32>
      %195 = vector.shape_cast %194 : vector<1x1x256xf32> to vector<1x256xf32>
      %196 = vector.broadcast %188 : f32 to vector<1x256xf32>
      %197 = arith.mulf %196, %195 : vector<1x256xf32>
      %198 = arith.addf %193, %197 : vector<1x256xf32>
      %c43 = arith.constant 43 : index
      %199 = memref.load %arg2[%c43] : memref<99xf32, #tpu.memory_space<smem>>
      %c92 = arith.constant 92 : index
      %200 = memref.load %arg2[%c92] : memref<99xf32, #tpu.memory_space<smem>>
      %c0_90 = arith.constant 0 : index
      %c0_91 = arith.constant 0 : index
      %c97 = arith.constant 97 : index
      %201 = vector.load %arg6[%c0_90, %c0_91, %c97] : memref<1x2x358xf32, #tpu.memory_space<vmem>>, vector<1x1x256xf32>
      %202 = vector.shape_cast %201 : vector<1x1x256xf32> to vector<1x256xf32>
      %203 = vector.broadcast %199 : f32 to vector<1x256xf32>
      %204 = arith.mulf %203, %202 : vector<1x256xf32>
      %205 = arith.addf %198, %204 : vector<1x256xf32>
      %c0_92 = arith.constant 0 : index
      %c1_93 = arith.constant 1 : index
      %c97_94 = arith.constant 97 : index
      %206 = vector.load %arg6[%c0_92, %c1_93, %c97_94] : memref<1x2x358xf32, #tpu.memory_space<vmem>>, vector<1x1x256xf32>
      %207 = vector.shape_cast %206 : vector<1x1x256xf32> to vector<1x256xf32>
      %208 = vector.broadcast %200 : f32 to vector<1x256xf32>
      %209 = arith.mulf %208, %207 : vector<1x256xf32>
      %210 = arith.addf %205, %209 : vector<1x256xf32>
      %c2_i32 = arith.constant 2 : i32
      %211 = vector.broadcast %c2_i32 : i32 to vector<1x256xi32>
      %212 = arith.cmpi sge, %30, %211 : vector<1x256xi32>
      %c18_i32 = arith.constant 18 : i32
      %213 = vector.broadcast %c18_i32 : i32 to vector<1x256xi32>
      %214 = arith.cmpi slt, %30, %213 : vector<1x256xi32>
      %215 = arith.andi %212, %214 : vector<1x256xi1>
      %cst_95 = arith.constant 0.000000e+00 : f32
      %216 = vector.broadcast %cst_95 : f32 to vector<1x256xf32>
      %217 = arith.select %215, %210, %216 : vector<1x256xi1>, vector<1x256xf32>
      %218 = arith.addf %125, %217 : vector<1x256xf32>
      %cst_96 = arith.constant 0.000000e+00 : f32
      %219 = vector.broadcast %cst_96 : f32 to vector<1x256xf32>
      %c2 = arith.constant 2 : index
      %220 = memref.load %arg2[%c2] : memref<99xf32, #tpu.memory_space<smem>>
      %c51_97 = arith.constant 51 : index
      %221 = memref.load %arg2[%c51_97] : memref<99xf32, #tpu.memory_space<smem>>
      %c0_98 = arith.constant 0 : index
      %c0_99 = arith.constant 0 : index
      %c2_100 = arith.constant 2 : index
      %222 = vector.load %arg6[%c0_98, %c0_99, %c2_100] : memref<1x2x358xf32, #tpu.memory_space<vmem>>, vector<1x1x256xf32>
      %223 = vector.shape_cast %222 : vector<1x1x256xf32> to vector<1x256xf32>
      %224 = vector.broadcast %220 : f32 to vector<1x256xf32>
      %225 = arith.mulf %224, %223 : vector<1x256xf32>
      %226 = arith.addf %219, %225 : vector<1x256xf32>
      %c0_101 = arith.constant 0 : index
      %c1_102 = arith.constant 1 : index
      %c2_103 = arith.constant 2 : index
      %227 = vector.load %arg6[%c0_101, %c1_102, %c2_103] : memref<1x2x358xf32, #tpu.memory_space<vmem>>, vector<1x1x256xf32>
      %228 = vector.shape_cast %227 : vector<1x1x256xf32> to vector<1x256xf32>
      %229 = vector.broadcast %221 : f32 to vector<1x256xf32>
      %230 = arith.mulf %229, %228 : vector<1x256xf32>
      %231 = arith.addf %226, %230 : vector<1x256xf32>
      %c9 = arith.constant 9 : index
      %232 = memref.load %arg2[%c9] : memref<99xf32, #tpu.memory_space<smem>>
      %c58 = arith.constant 58 : index
      %233 = memref.load %arg2[%c58] : memref<99xf32, #tpu.memory_space<smem>>
      %c0_104 = arith.constant 0 : index
      %c0_105 = arith.constant 0 : index
      %c18 = arith.constant 18 : index
      %234 = vector.load %arg6[%c0_104, %c0_105, %c18] : memref<1x2x358xf32, #tpu.memory_space<vmem>>, vector<1x1x256xf32>
      %235 = vector.shape_cast %234 : vector<1x1x256xf32> to vector<1x256xf32>
      %236 = vector.broadcast %232 : f32 to vector<1x256xf32>
      %237 = arith.mulf %236, %235 : vector<1x256xf32>
      %238 = arith.addf %231, %237 : vector<1x256xf32>
      %c0_106 = arith.constant 0 : index
      %c1_107 = arith.constant 1 : index
      %c18_108 = arith.constant 18 : index
      %239 = vector.load %arg6[%c0_106, %c1_107, %c18_108] : memref<1x2x358xf32, #tpu.memory_space<vmem>>, vector<1x1x256xf32>
      %240 = vector.shape_cast %239 : vector<1x1x256xf32> to vector<1x256xf32>
      %241 = vector.broadcast %233 : f32 to vector<1x256xf32>
      %242 = arith.mulf %241, %240 : vector<1x256xf32>
      %243 = arith.addf %238, %242 : vector<1x256xf32>
      %c16_109 = arith.constant 16 : index
      %244 = memref.load %arg2[%c16_109] : memref<99xf32, #tpu.memory_space<smem>>
      %c65_110 = arith.constant 65 : index
      %245 = memref.load %arg2[%c65_110] : memref<99xf32, #tpu.memory_space<smem>>
      %c0_111 = arith.constant 0 : index
      %c0_112 = arith.constant 0 : index
      %c34 = arith.constant 34 : index
      %246 = vector.load %arg6[%c0_111, %c0_112, %c34] : memref<1x2x358xf32, #tpu.memory_space<vmem>>, vector<1x1x256xf32>
      %247 = vector.shape_cast %246 : vector<1x1x256xf32> to vector<1x256xf32>
      %248 = vector.broadcast %244 : f32 to vector<1x256xf32>
      %249 = arith.mulf %248, %247 : vector<1x256xf32>
      %250 = arith.addf %243, %249 : vector<1x256xf32>
      %c0_113 = arith.constant 0 : index
      %c1_114 = arith.constant 1 : index
      %c34_115 = arith.constant 34 : index
      %251 = vector.load %arg6[%c0_113, %c1_114, %c34_115] : memref<1x2x358xf32, #tpu.memory_space<vmem>>, vector<1x1x256xf32>
      %252 = vector.shape_cast %251 : vector<1x1x256xf32> to vector<1x256xf32>
      %253 = vector.broadcast %245 : f32 to vector<1x256xf32>
      %254 = arith.mulf %253, %252 : vector<1x256xf32>
      %255 = arith.addf %250, %254 : vector<1x256xf32>
      %c23 = arith.constant 23 : index
      %256 = memref.load %arg2[%c23] : memref<99xf32, #tpu.memory_space<smem>>
      %c72 = arith.constant 72 : index
      %257 = memref.load %arg2[%c72] : memref<99xf32, #tpu.memory_space<smem>>
      %c0_116 = arith.constant 0 : index
      %c0_117 = arith.constant 0 : index
      %c50_118 = arith.constant 50 : index
      %258 = vector.load %arg6[%c0_116, %c0_117, %c50_118] : memref<1x2x358xf32, #tpu.memory_space<vmem>>, vector<1x1x256xf32>
      %259 = vector.shape_cast %258 : vector<1x1x256xf32> to vector<1x256xf32>
      %260 = vector.broadcast %256 : f32 to vector<1x256xf32>
      %261 = arith.mulf %260, %259 : vector<1x256xf32>
      %262 = arith.addf %255, %261 : vector<1x256xf32>
      %c0_119 = arith.constant 0 : index
      %c1_120 = arith.constant 1 : index
      %c50_121 = arith.constant 50 : index
      %263 = vector.load %arg6[%c0_119, %c1_120, %c50_121] : memref<1x2x358xf32, #tpu.memory_space<vmem>>, vector<1x1x256xf32>
      %264 = vector.shape_cast %263 : vector<1x1x256xf32> to vector<1x256xf32>
      %265 = vector.broadcast %257 : f32 to vector<1x256xf32>
      %266 = arith.mulf %265, %264 : vector<1x256xf32>
      %267 = arith.addf %262, %266 : vector<1x256xf32>
      %c30 = arith.constant 30 : index
      %268 = memref.load %arg2[%c30] : memref<99xf32, #tpu.memory_space<smem>>
      %c79 = arith.constant 79 : index
      %269 = memref.load %arg2[%c79] : memref<99xf32, #tpu.memory_space<smem>>
      %c0_122 = arith.constant 0 : index
      %c0_123 = arith.constant 0 : index
      %c66 = arith.constant 66 : index
      %270 = vector.load %arg6[%c0_122, %c0_123, %c66] : memref<1x2x358xf32, #tpu.memory_space<vmem>>, vector<1x1x256xf32>
      %271 = vector.shape_cast %270 : vector<1x1x256xf32> to vector<1x256xf32>
      %272 = vector.broadcast %268 : f32 to vector<1x256xf32>
      %273 = arith.mulf %272, %271 : vector<1x256xf32>
      %274 = arith.addf %267, %273 : vector<1x256xf32>
      %c0_124 = arith.constant 0 : index
      %c1_125 = arith.constant 1 : index
      %c66_126 = arith.constant 66 : index
      %275 = vector.load %arg6[%c0_124, %c1_125, %c66_126] : memref<1x2x358xf32, #tpu.memory_space<vmem>>, vector<1x1x256xf32>
      %276 = vector.shape_cast %275 : vector<1x1x256xf32> to vector<1x256xf32>
      %277 = vector.broadcast %269 : f32 to vector<1x256xf32>
      %278 = arith.mulf %277, %276 : vector<1x256xf32>
      %279 = arith.addf %274, %278 : vector<1x256xf32>
      %c37 = arith.constant 37 : index
      %280 = memref.load %arg2[%c37] : memref<99xf32, #tpu.memory_space<smem>>
      %c86 = arith.constant 86 : index
      %281 = memref.load %arg2[%c86] : memref<99xf32, #tpu.memory_space<smem>>
      %c0_127 = arith.constant 0 : index
      %c0_128 = arith.constant 0 : index
      %c82 = arith.constant 82 : index
      %282 = vector.load %arg6[%c0_127, %c0_128, %c82] : memref<1x2x358xf32, #tpu.memory_space<vmem>>, vector<1x1x256xf32>
      %283 = vector.shape_cast %282 : vector<1x1x256xf32> to vector<1x256xf32>
      %284 = vector.broadcast %280 : f32 to vector<1x256xf32>
      %285 = arith.mulf %284, %283 : vector<1x256xf32>
      %286 = arith.addf %279, %285 : vector<1x256xf32>
      %c0_129 = arith.constant 0 : index
      %c1_130 = arith.constant 1 : index
      %c82_131 = arith.constant 82 : index
      %287 = vector.load %arg6[%c0_129, %c1_130, %c82_131] : memref<1x2x358xf32, #tpu.memory_space<vmem>>, vector<1x1x256xf32>
      %288 = vector.shape_cast %287 : vector<1x1x256xf32> to vector<1x256xf32>
      %289 = vector.broadcast %281 : f32 to vector<1x256xf32>
      %290 = arith.mulf %289, %288 : vector<1x256xf32>
      %291 = arith.addf %286, %290 : vector<1x256xf32>
      %c44 = arith.constant 44 : index
      %292 = memref.load %arg2[%c44] : memref<99xf32, #tpu.memory_space<smem>>
      %c93 = arith.constant 93 : index
      %293 = memref.load %arg2[%c93] : memref<99xf32, #tpu.memory_space<smem>>
      %c0_132 = arith.constant 0 : index
      %c0_133 = arith.constant 0 : index
      %c98_134 = arith.constant 98 : index
      %294 = vector.load %arg6[%c0_132, %c0_133, %c98_134] : memref<1x2x358xf32, #tpu.memory_space<vmem>>, vector<1x1x256xf32>
      %295 = vector.shape_cast %294 : vector<1x1x256xf32> to vector<1x256xf32>
      %296 = vector.broadcast %292 : f32 to vector<1x256xf32>
      %297 = arith.mulf %296, %295 : vector<1x256xf32>
      %298 = arith.addf %291, %297 : vector<1x256xf32>
      %c0_135 = arith.constant 0 : index
      %c1_136 = arith.constant 1 : index
      %c98_137 = arith.constant 98 : index
      %299 = vector.load %arg6[%c0_135, %c1_136, %c98_137] : memref<1x2x358xf32, #tpu.memory_space<vmem>>, vector<1x1x256xf32>
      %300 = vector.shape_cast %299 : vector<1x1x256xf32> to vector<1x256xf32>
      %301 = vector.broadcast %293 : f32 to vector<1x256xf32>
      %302 = arith.mulf %301, %300 : vector<1x256xf32>
      %303 = arith.addf %298, %302 : vector<1x256xf32>
      %c1_i32_138 = arith.constant 1 : i32
      %304 = vector.broadcast %c1_i32_138 : i32 to vector<1x256xi32>
      %305 = arith.cmpi sge, %30, %304 : vector<1x256xi32>
      %c17_i32 = arith.constant 17 : i32
      %306 = vector.broadcast %c17_i32 : i32 to vector<1x256xi32>
      %307 = arith.cmpi slt, %30, %306 : vector<1x256xi32>
      %308 = arith.andi %305, %307 : vector<1x256xi1>
      %cst_139 = arith.constant 0.000000e+00 : f32
      %309 = vector.broadcast %cst_139 : f32 to vector<1x256xf32>
      %310 = arith.select %308, %303, %309 : vector<1x256xi1>, vector<1x256xf32>
      %311 = arith.addf %218, %310 : vector<1x256xf32>
      %cst_140 = arith.constant 0.000000e+00 : f32
      %312 = vector.broadcast %cst_140 : f32 to vector<1x256xf32>
      %c3 = arith.constant 3 : index
      %313 = memref.load %arg2[%c3] : memref<99xf32, #tpu.memory_space<smem>>
      %c52 = arith.constant 52 : index
      %314 = memref.load %arg2[%c52] : memref<99xf32, #tpu.memory_space<smem>>
      %c0_141 = arith.constant 0 : index
      %c0_142 = arith.constant 0 : index
      %c3_143 = arith.constant 3 : index
      %315 = vector.load %arg6[%c0_141, %c0_142, %c3_143] : memref<1x2x358xf32, #tpu.memory_space<vmem>>, vector<1x1x256xf32>
      %316 = vector.shape_cast %315 : vector<1x1x256xf32> to vector<1x256xf32>
      %317 = vector.broadcast %313 : f32 to vector<1x256xf32>
      %318 = arith.mulf %317, %316 : vector<1x256xf32>
      %319 = arith.addf %312, %318 : vector<1x256xf32>
      %c0_144 = arith.constant 0 : index
      %c1_145 = arith.constant 1 : index
      %c3_146 = arith.constant 3 : index
      %320 = vector.load %arg6[%c0_144, %c1_145, %c3_146] : memref<1x2x358xf32, #tpu.memory_space<vmem>>, vector<1x1x256xf32>
      %321 = vector.shape_cast %320 : vector<1x1x256xf32> to vector<1x256xf32>
      %322 = vector.broadcast %314 : f32 to vector<1x256xf32>
      %323 = arith.mulf %322, %321 : vector<1x256xf32>
      %324 = arith.addf %319, %323 : vector<1x256xf32>
      %c10 = arith.constant 10 : index
      %325 = memref.load %arg2[%c10] : memref<99xf32, #tpu.memory_space<smem>>
      %c59 = arith.constant 59 : index
      %326 = memref.load %arg2[%c59] : memref<99xf32, #tpu.memory_space<smem>>
      %c0_147 = arith.constant 0 : index
      %c0_148 = arith.constant 0 : index
      %c19 = arith.constant 19 : index
      %327 = vector.load %arg6[%c0_147, %c0_148, %c19] : memref<1x2x358xf32, #tpu.memory_space<vmem>>, vector<1x1x256xf32>
      %328 = vector.shape_cast %327 : vector<1x1x256xf32> to vector<1x256xf32>
      %329 = vector.broadcast %325 : f32 to vector<1x256xf32>
      %330 = arith.mulf %329, %328 : vector<1x256xf32>
      %331 = arith.addf %324, %330 : vector<1x256xf32>
      %c0_149 = arith.constant 0 : index
      %c1_150 = arith.constant 1 : index
      %c19_151 = arith.constant 19 : index
      %332 = vector.load %arg6[%c0_149, %c1_150, %c19_151] : memref<1x2x358xf32, #tpu.memory_space<vmem>>, vector<1x1x256xf32>
      %333 = vector.shape_cast %332 : vector<1x1x256xf32> to vector<1x256xf32>
      %334 = vector.broadcast %326 : f32 to vector<1x256xf32>
      %335 = arith.mulf %334, %333 : vector<1x256xf32>
      %336 = arith.addf %331, %335 : vector<1x256xf32>
      %c17_152 = arith.constant 17 : index
      %337 = memref.load %arg2[%c17_152] : memref<99xf32, #tpu.memory_space<smem>>
      %c66_153 = arith.constant 66 : index
      %338 = memref.load %arg2[%c66_153] : memref<99xf32, #tpu.memory_space<smem>>
      %c0_154 = arith.constant 0 : index
      %c0_155 = arith.constant 0 : index
      %c35_156 = arith.constant 35 : index
      %339 = vector.load %arg6[%c0_154, %c0_155, %c35_156] : memref<1x2x358xf32, #tpu.memory_space<vmem>>, vector<1x1x256xf32>
      %340 = vector.shape_cast %339 : vector<1x1x256xf32> to vector<1x256xf32>
      %341 = vector.broadcast %337 : f32 to vector<1x256xf32>
      %342 = arith.mulf %341, %340 : vector<1x256xf32>
      %343 = arith.addf %336, %342 : vector<1x256xf32>
      %c0_157 = arith.constant 0 : index
      %c1_158 = arith.constant 1 : index
      %c35_159 = arith.constant 35 : index
      %344 = vector.load %arg6[%c0_157, %c1_158, %c35_159] : memref<1x2x358xf32, #tpu.memory_space<vmem>>, vector<1x1x256xf32>
      %345 = vector.shape_cast %344 : vector<1x1x256xf32> to vector<1x256xf32>
      %346 = vector.broadcast %338 : f32 to vector<1x256xf32>
      %347 = arith.mulf %346, %345 : vector<1x256xf32>
      %348 = arith.addf %343, %347 : vector<1x256xf32>
      %c24 = arith.constant 24 : index
      %349 = memref.load %arg2[%c24] : memref<99xf32, #tpu.memory_space<smem>>
      %c73 = arith.constant 73 : index
      %350 = memref.load %arg2[%c73] : memref<99xf32, #tpu.memory_space<smem>>
      %c0_160 = arith.constant 0 : index
      %c0_161 = arith.constant 0 : index
      %c51_162 = arith.constant 51 : index
      %351 = vector.load %arg6[%c0_160, %c0_161, %c51_162] : memref<1x2x358xf32, #tpu.memory_space<vmem>>, vector<1x1x256xf32>
      %352 = vector.shape_cast %351 : vector<1x1x256xf32> to vector<1x256xf32>
      %353 = vector.broadcast %349 : f32 to vector<1x256xf32>
      %354 = arith.mulf %353, %352 : vector<1x256xf32>
      %355 = arith.addf %348, %354 : vector<1x256xf32>
      %c0_163 = arith.constant 0 : index
      %c1_164 = arith.constant 1 : index
      %c51_165 = arith.constant 51 : index
      %356 = vector.load %arg6[%c0_163, %c1_164, %c51_165] : memref<1x2x358xf32, #tpu.memory_space<vmem>>, vector<1x1x256xf32>
      %357 = vector.shape_cast %356 : vector<1x1x256xf32> to vector<1x256xf32>
      %358 = vector.broadcast %350 : f32 to vector<1x256xf32>
      %359 = arith.mulf %358, %357 : vector<1x256xf32>
      %360 = arith.addf %355, %359 : vector<1x256xf32>
      %c31 = arith.constant 31 : index
      %361 = memref.load %arg2[%c31] : memref<99xf32, #tpu.memory_space<smem>>
      %c80_166 = arith.constant 80 : index
      %362 = memref.load %arg2[%c80_166] : memref<99xf32, #tpu.memory_space<smem>>
      %c0_167 = arith.constant 0 : index
      %c0_168 = arith.constant 0 : index
      %c67 = arith.constant 67 : index
      %363 = vector.load %arg6[%c0_167, %c0_168, %c67] : memref<1x2x358xf32, #tpu.memory_space<vmem>>, vector<1x1x256xf32>
      %364 = vector.shape_cast %363 : vector<1x1x256xf32> to vector<1x256xf32>
      %365 = vector.broadcast %361 : f32 to vector<1x256xf32>
      %366 = arith.mulf %365, %364 : vector<1x256xf32>
      %367 = arith.addf %360, %366 : vector<1x256xf32>
      %c0_169 = arith.constant 0 : index
      %c1_170 = arith.constant 1 : index
      %c67_171 = arith.constant 67 : index
      %368 = vector.load %arg6[%c0_169, %c1_170, %c67_171] : memref<1x2x358xf32, #tpu.memory_space<vmem>>, vector<1x1x256xf32>
      %369 = vector.shape_cast %368 : vector<1x1x256xf32> to vector<1x256xf32>
      %370 = vector.broadcast %362 : f32 to vector<1x256xf32>
      %371 = arith.mulf %370, %369 : vector<1x256xf32>
      %372 = arith.addf %367, %371 : vector<1x256xf32>
      %c38 = arith.constant 38 : index
      %373 = memref.load %arg2[%c38] : memref<99xf32, #tpu.memory_space<smem>>
      %c87 = arith.constant 87 : index
      %374 = memref.load %arg2[%c87] : memref<99xf32, #tpu.memory_space<smem>>
      %c0_172 = arith.constant 0 : index
      %c0_173 = arith.constant 0 : index
      %c83 = arith.constant 83 : index
      %375 = vector.load %arg6[%c0_172, %c0_173, %c83] : memref<1x2x358xf32, #tpu.memory_space<vmem>>, vector<1x1x256xf32>
      %376 = vector.shape_cast %375 : vector<1x1x256xf32> to vector<1x256xf32>
      %377 = vector.broadcast %373 : f32 to vector<1x256xf32>
      %378 = arith.mulf %377, %376 : vector<1x256xf32>
      %379 = arith.addf %372, %378 : vector<1x256xf32>
      %c0_174 = arith.constant 0 : index
      %c1_175 = arith.constant 1 : index
      %c83_176 = arith.constant 83 : index
      %380 = vector.load %arg6[%c0_174, %c1_175, %c83_176] : memref<1x2x358xf32, #tpu.memory_space<vmem>>, vector<1x1x256xf32>
      %381 = vector.shape_cast %380 : vector<1x1x256xf32> to vector<1x256xf32>
      %382 = vector.broadcast %374 : f32 to vector<1x256xf32>
      %383 = arith.mulf %382, %381 : vector<1x256xf32>
      %384 = arith.addf %379, %383 : vector<1x256xf32>
      %c45 = arith.constant 45 : index
      %385 = memref.load %arg2[%c45] : memref<99xf32, #tpu.memory_space<smem>>
      %c94 = arith.constant 94 : index
      %386 = memref.load %arg2[%c94] : memref<99xf32, #tpu.memory_space<smem>>
      %c0_177 = arith.constant 0 : index
      %c0_178 = arith.constant 0 : index
      %c99 = arith.constant 99 : index
      %387 = vector.load %arg6[%c0_177, %c0_178, %c99] : memref<1x2x358xf32, #tpu.memory_space<vmem>>, vector<1x1x256xf32>
      %388 = vector.shape_cast %387 : vector<1x1x256xf32> to vector<1x256xf32>
      %389 = vector.broadcast %385 : f32 to vector<1x256xf32>
      %390 = arith.mulf %389, %388 : vector<1x256xf32>
      %391 = arith.addf %384, %390 : vector<1x256xf32>
      %c0_179 = arith.constant 0 : index
      %c1_180 = arith.constant 1 : index
      %c99_181 = arith.constant 99 : index
      %392 = vector.load %arg6[%c0_179, %c1_180, %c99_181] : memref<1x2x358xf32, #tpu.memory_space<vmem>>, vector<1x1x256xf32>
      %393 = vector.shape_cast %392 : vector<1x1x256xf32> to vector<1x256xf32>
      %394 = vector.broadcast %386 : f32 to vector<1x256xf32>
      %395 = arith.mulf %394, %393 : vector<1x256xf32>
      %396 = arith.addf %391, %395 : vector<1x256xf32>
      %c0_i32_182 = arith.constant 0 : i32
      %397 = vector.broadcast %c0_i32_182 : i32 to vector<1x256xi32>
      %398 = arith.cmpi sge, %30, %397 : vector<1x256xi32>
      %c16_i32_183 = arith.constant 16 : i32
      %399 = vector.broadcast %c16_i32_183 : i32 to vector<1x256xi32>
      %400 = arith.cmpi slt, %30, %399 : vector<1x256xi32>
      %401 = arith.andi %398, %400 : vector<1x256xi1>
      %cst_184 = arith.constant 0.000000e+00 : f32
      %402 = vector.broadcast %cst_184 : f32 to vector<1x256xf32>
      %403 = arith.select %401, %396, %402 : vector<1x256xi1>, vector<1x256xf32>
      %404 = arith.addf %311, %403 : vector<1x256xf32>
      %cst_185 = arith.constant 0.000000e+00 : f32
      %405 = vector.broadcast %cst_185 : f32 to vector<1x256xf32>
      %c4 = arith.constant 4 : index
      %406 = memref.load %arg2[%c4] : memref<99xf32, #tpu.memory_space<smem>>
      %c53 = arith.constant 53 : index
      %407 = memref.load %arg2[%c53] : memref<99xf32, #tpu.memory_space<smem>>
      %c0_186 = arith.constant 0 : index
      %c0_187 = arith.constant 0 : index
      %c4_188 = arith.constant 4 : index
      %408 = vector.load %arg6[%c0_186, %c0_187, %c4_188] : memref<1x2x358xf32, #tpu.memory_space<vmem>>, vector<1x1x256xf32>
      %409 = vector.shape_cast %408 : vector<1x1x256xf32> to vector<1x256xf32>
      %410 = vector.broadcast %406 : f32 to vector<1x256xf32>
      %411 = arith.mulf %410, %409 : vector<1x256xf32>
      %412 = arith.addf %405, %411 : vector<1x256xf32>
      %c0_189 = arith.constant 0 : index
      %c1_190 = arith.constant 1 : index
      %c4_191 = arith.constant 4 : index
      %413 = vector.load %arg6[%c0_189, %c1_190, %c4_191] : memref<1x2x358xf32, #tpu.memory_space<vmem>>, vector<1x1x256xf32>
      %414 = vector.shape_cast %413 : vector<1x1x256xf32> to vector<1x256xf32>
      %415 = vector.broadcast %407 : f32 to vector<1x256xf32>
      %416 = arith.mulf %415, %414 : vector<1x256xf32>
      %417 = arith.addf %412, %416 : vector<1x256xf32>
      %c11 = arith.constant 11 : index
      %418 = memref.load %arg2[%c11] : memref<99xf32, #tpu.memory_space<smem>>
      %c60 = arith.constant 60 : index
      %419 = memref.load %arg2[%c60] : memref<99xf32, #tpu.memory_space<smem>>
      %c0_192 = arith.constant 0 : index
      %c0_193 = arith.constant 0 : index
      %c20 = arith.constant 20 : index
      %420 = vector.load %arg6[%c0_192, %c0_193, %c20] : memref<1x2x358xf32, #tpu.memory_space<vmem>>, vector<1x1x256xf32>
      %421 = vector.shape_cast %420 : vector<1x1x256xf32> to vector<1x256xf32>
      %422 = vector.broadcast %418 : f32 to vector<1x256xf32>
      %423 = arith.mulf %422, %421 : vector<1x256xf32>
      %424 = arith.addf %417, %423 : vector<1x256xf32>
      %c0_194 = arith.constant 0 : index
      %c1_195 = arith.constant 1 : index
      %c20_196 = arith.constant 20 : index
      %425 = vector.load %arg6[%c0_194, %c1_195, %c20_196] : memref<1x2x358xf32, #tpu.memory_space<vmem>>, vector<1x1x256xf32>
      %426 = vector.shape_cast %425 : vector<1x1x256xf32> to vector<1x256xf32>
      %427 = vector.broadcast %419 : f32 to vector<1x256xf32>
      %428 = arith.mulf %427, %426 : vector<1x256xf32>
      %429 = arith.addf %424, %428 : vector<1x256xf32>
      %c18_197 = arith.constant 18 : index
      %430 = memref.load %arg2[%c18_197] : memref<99xf32, #tpu.memory_space<smem>>
      %c67_198 = arith.constant 67 : index
      %431 = memref.load %arg2[%c67_198] : memref<99xf32, #tpu.memory_space<smem>>
      %c0_199 = arith.constant 0 : index
      %c0_200 = arith.constant 0 : index
      %c36_201 = arith.constant 36 : index
      %432 = vector.load %arg6[%c0_199, %c0_200, %c36_201] : memref<1x2x358xf32, #tpu.memory_space<vmem>>, vector<1x1x256xf32>
      %433 = vector.shape_cast %432 : vector<1x1x256xf32> to vector<1x256xf32>
      %434 = vector.broadcast %430 : f32 to vector<1x256xf32>
      %435 = arith.mulf %434, %433 : vector<1x256xf32>
      %436 = arith.addf %429, %435 : vector<1x256xf32>
      %c0_202 = arith.constant 0 : index
      %c1_203 = arith.constant 1 : index
      %c36_204 = arith.constant 36 : index
      %437 = vector.load %arg6[%c0_202, %c1_203, %c36_204] : memref<1x2x358xf32, #tpu.memory_space<vmem>>, vector<1x1x256xf32>
      %438 = vector.shape_cast %437 : vector<1x1x256xf32> to vector<1x256xf32>
      %439 = vector.broadcast %431 : f32 to vector<1x256xf32>
      %440 = arith.mulf %439, %438 : vector<1x256xf32>
      %441 = arith.addf %436, %440 : vector<1x256xf32>
      %c25 = arith.constant 25 : index
      %442 = memref.load %arg2[%c25] : memref<99xf32, #tpu.memory_space<smem>>
      %c74 = arith.constant 74 : index
      %443 = memref.load %arg2[%c74] : memref<99xf32, #tpu.memory_space<smem>>
      %c0_205 = arith.constant 0 : index
      %c0_206 = arith.constant 0 : index
      %c52_207 = arith.constant 52 : index
      %444 = vector.load %arg6[%c0_205, %c0_206, %c52_207] : memref<1x2x358xf32, #tpu.memory_space<vmem>>, vector<1x1x256xf32>
      %445 = vector.shape_cast %444 : vector<1x1x256xf32> to vector<1x256xf32>
      %446 = vector.broadcast %442 : f32 to vector<1x256xf32>
      %447 = arith.mulf %446, %445 : vector<1x256xf32>
      %448 = arith.addf %441, %447 : vector<1x256xf32>
      %c0_208 = arith.constant 0 : index
      %c1_209 = arith.constant 1 : index
      %c52_210 = arith.constant 52 : index
      %449 = vector.load %arg6[%c0_208, %c1_209, %c52_210] : memref<1x2x358xf32, #tpu.memory_space<vmem>>, vector<1x1x256xf32>
      %450 = vector.shape_cast %449 : vector<1x1x256xf32> to vector<1x256xf32>
      %451 = vector.broadcast %443 : f32 to vector<1x256xf32>
      %452 = arith.mulf %451, %450 : vector<1x256xf32>
      %453 = arith.addf %448, %452 : vector<1x256xf32>
      %c32_211 = arith.constant 32 : index
      %454 = memref.load %arg2[%c32_211] : memref<99xf32, #tpu.memory_space<smem>>
      %c81_212 = arith.constant 81 : index
      %455 = memref.load %arg2[%c81_212] : memref<99xf32, #tpu.memory_space<smem>>
      %c0_213 = arith.constant 0 : index
      %c0_214 = arith.constant 0 : index
      %c68 = arith.constant 68 : index
      %456 = vector.load %arg6[%c0_213, %c0_214, %c68] : memref<1x2x358xf32, #tpu.memory_space<vmem>>, vector<1x1x256xf32>
      %457 = vector.shape_cast %456 : vector<1x1x256xf32> to vector<1x256xf32>
      %458 = vector.broadcast %454 : f32 to vector<1x256xf32>
      %459 = arith.mulf %458, %457 : vector<1x256xf32>
      %460 = arith.addf %453, %459 : vector<1x256xf32>
      %c0_215 = arith.constant 0 : index
      %c1_216 = arith.constant 1 : index
      %c68_217 = arith.constant 68 : index
      %461 = vector.load %arg6[%c0_215, %c1_216, %c68_217] : memref<1x2x358xf32, #tpu.memory_space<vmem>>, vector<1x1x256xf32>
      %462 = vector.shape_cast %461 : vector<1x1x256xf32> to vector<1x256xf32>
      %463 = vector.broadcast %455 : f32 to vector<1x256xf32>
      %464 = arith.mulf %463, %462 : vector<1x256xf32>
      %465 = arith.addf %460, %464 : vector<1x256xf32>
      %c39 = arith.constant 39 : index
      %466 = memref.load %arg2[%c39] : memref<99xf32, #tpu.memory_space<smem>>
      %c88 = arith.constant 88 : index
      %467 = memref.load %arg2[%c88] : memref<99xf32, #tpu.memory_space<smem>>
      %c0_218 = arith.constant 0 : index
      %c0_219 = arith.constant 0 : index
      %c84_220 = arith.constant 84 : index
      %468 = vector.load %arg6[%c0_218, %c0_219, %c84_220] : memref<1x2x358xf32, #tpu.memory_space<vmem>>, vector<1x1x256xf32>
      %469 = vector.shape_cast %468 : vector<1x1x256xf32> to vector<1x256xf32>
      %470 = vector.broadcast %466 : f32 to vector<1x256xf32>
      %471 = arith.mulf %470, %469 : vector<1x256xf32>
      %472 = arith.addf %465, %471 : vector<1x256xf32>
      %c0_221 = arith.constant 0 : index
      %c1_222 = arith.constant 1 : index
      %c84_223 = arith.constant 84 : index
      %473 = vector.load %arg6[%c0_221, %c1_222, %c84_223] : memref<1x2x358xf32, #tpu.memory_space<vmem>>, vector<1x1x256xf32>
      %474 = vector.shape_cast %473 : vector<1x1x256xf32> to vector<1x256xf32>
      %475 = vector.broadcast %467 : f32 to vector<1x256xf32>
      %476 = arith.mulf %475, %474 : vector<1x256xf32>
      %477 = arith.addf %472, %476 : vector<1x256xf32>
      %c46 = arith.constant 46 : index
      %478 = memref.load %arg2[%c46] : memref<99xf32, #tpu.memory_space<smem>>
      %c95 = arith.constant 95 : index
      %479 = memref.load %arg2[%c95] : memref<99xf32, #tpu.memory_space<smem>>
      %c0_224 = arith.constant 0 : index
      %c0_225 = arith.constant 0 : index
      %c100 = arith.constant 100 : index
      %480 = vector.load %arg6[%c0_224, %c0_225, %c100] : memref<1x2x358xf32, #tpu.memory_space<vmem>>, vector<1x1x256xf32>
      %481 = vector.shape_cast %480 : vector<1x1x256xf32> to vector<1x256xf32>
      %482 = vector.broadcast %478 : f32 to vector<1x256xf32>
      %483 = arith.mulf %482, %481 : vector<1x256xf32>
      %484 = arith.addf %477, %483 : vector<1x256xf32>
      %c0_226 = arith.constant 0 : index
      %c1_227 = arith.constant 1 : index
      %c100_228 = arith.constant 100 : index
      %485 = vector.load %arg6[%c0_226, %c1_227, %c100_228] : memref<1x2x358xf32, #tpu.memory_space<vmem>>, vector<1x1x256xf32>
      %486 = vector.shape_cast %485 : vector<1x1x256xf32> to vector<1x256xf32>
      %487 = vector.broadcast %479 : f32 to vector<1x256xf32>
      %488 = arith.mulf %487, %486 : vector<1x256xf32>
      %489 = arith.addf %484, %488 : vector<1x256xf32>
      %c-1_i32 = arith.constant -1 : i32
      %490 = vector.broadcast %c-1_i32 : i32 to vector<1x256xi32>
      %491 = arith.cmpi sge, %30, %490 : vector<1x256xi32>
      %c15_i32 = arith.constant 15 : i32
      %492 = vector.broadcast %c15_i32 : i32 to vector<1x256xi32>
      %493 = arith.cmpi slt, %30, %492 : vector<1x256xi32>
      %494 = arith.andi %491, %493 : vector<1x256xi1>
      %cst_229 = arith.constant 0.000000e+00 : f32
      %495 = vector.broadcast %cst_229 : f32 to vector<1x256xf32>
      %496 = arith.select %494, %489, %495 : vector<1x256xi1>, vector<1x256xf32>
      %497 = arith.addf %404, %496 : vector<1x256xf32>
      %cst_230 = arith.constant 0.000000e+00 : f32
      %498 = vector.broadcast %cst_230 : f32 to vector<1x256xf32>
      %c5 = arith.constant 5 : index
      %499 = memref.load %arg2[%c5] : memref<99xf32, #tpu.memory_space<smem>>
      %c54 = arith.constant 54 : index
      %500 = memref.load %arg2[%c54] : memref<99xf32, #tpu.memory_space<smem>>
      %c0_231 = arith.constant 0 : index
      %c0_232 = arith.constant 0 : index
      %c5_233 = arith.constant 5 : index
      %501 = vector.load %arg6[%c0_231, %c0_232, %c5_233] : memref<1x2x358xf32, #tpu.memory_space<vmem>>, vector<1x1x256xf32>
      %502 = vector.shape_cast %501 : vector<1x1x256xf32> to vector<1x256xf32>
      %503 = vector.broadcast %499 : f32 to vector<1x256xf32>
      %504 = arith.mulf %503, %502 : vector<1x256xf32>
      %505 = arith.addf %498, %504 : vector<1x256xf32>
      %c0_234 = arith.constant 0 : index
      %c1_235 = arith.constant 1 : index
      %c5_236 = arith.constant 5 : index
      %506 = vector.load %arg6[%c0_234, %c1_235, %c5_236] : memref<1x2x358xf32, #tpu.memory_space<vmem>>, vector<1x1x256xf32>
      %507 = vector.shape_cast %506 : vector<1x1x256xf32> to vector<1x256xf32>
      %508 = vector.broadcast %500 : f32 to vector<1x256xf32>
      %509 = arith.mulf %508, %507 : vector<1x256xf32>
      %510 = arith.addf %505, %509 : vector<1x256xf32>
      %c12 = arith.constant 12 : index
      %511 = memref.load %arg2[%c12] : memref<99xf32, #tpu.memory_space<smem>>
      %c61 = arith.constant 61 : index
      %512 = memref.load %arg2[%c61] : memref<99xf32, #tpu.memory_space<smem>>
      %c0_237 = arith.constant 0 : index
      %c0_238 = arith.constant 0 : index
      %c21_239 = arith.constant 21 : index
      %513 = vector.load %arg6[%c0_237, %c0_238, %c21_239] : memref<1x2x358xf32, #tpu.memory_space<vmem>>, vector<1x1x256xf32>
      %514 = vector.shape_cast %513 : vector<1x1x256xf32> to vector<1x256xf32>
      %515 = vector.broadcast %511 : f32 to vector<1x256xf32>
      %516 = arith.mulf %515, %514 : vector<1x256xf32>
      %517 = arith.addf %510, %516 : vector<1x256xf32>
      %c0_240 = arith.constant 0 : index
      %c1_241 = arith.constant 1 : index
      %c21_242 = arith.constant 21 : index
      %518 = vector.load %arg6[%c0_240, %c1_241, %c21_242] : memref<1x2x358xf32, #tpu.memory_space<vmem>>, vector<1x1x256xf32>
      %519 = vector.shape_cast %518 : vector<1x1x256xf32> to vector<1x256xf32>
      %520 = vector.broadcast %512 : f32 to vector<1x256xf32>
      %521 = arith.mulf %520, %519 : vector<1x256xf32>
      %522 = arith.addf %517, %521 : vector<1x256xf32>
      %c19_243 = arith.constant 19 : index
      %523 = memref.load %arg2[%c19_243] : memref<99xf32, #tpu.memory_space<smem>>
      %c68_244 = arith.constant 68 : index
      %524 = memref.load %arg2[%c68_244] : memref<99xf32, #tpu.memory_space<smem>>
      %c0_245 = arith.constant 0 : index
      %c0_246 = arith.constant 0 : index
      %c37_247 = arith.constant 37 : index
      %525 = vector.load %arg6[%c0_245, %c0_246, %c37_247] : memref<1x2x358xf32, #tpu.memory_space<vmem>>, vector<1x1x256xf32>
      %526 = vector.shape_cast %525 : vector<1x1x256xf32> to vector<1x256xf32>
      %527 = vector.broadcast %523 : f32 to vector<1x256xf32>
      %528 = arith.mulf %527, %526 : vector<1x256xf32>
      %529 = arith.addf %522, %528 : vector<1x256xf32>
      %c0_248 = arith.constant 0 : index
      %c1_249 = arith.constant 1 : index
      %c37_250 = arith.constant 37 : index
      %530 = vector.load %arg6[%c0_248, %c1_249, %c37_250] : memref<1x2x358xf32, #tpu.memory_space<vmem>>, vector<1x1x256xf32>
      %531 = vector.shape_cast %530 : vector<1x1x256xf32> to vector<1x256xf32>
      %532 = vector.broadcast %524 : f32 to vector<1x256xf32>
      %533 = arith.mulf %532, %531 : vector<1x256xf32>
      %534 = arith.addf %529, %533 : vector<1x256xf32>
      %c26 = arith.constant 26 : index
      %535 = memref.load %arg2[%c26] : memref<99xf32, #tpu.memory_space<smem>>
      %c75 = arith.constant 75 : index
      %536 = memref.load %arg2[%c75] : memref<99xf32, #tpu.memory_space<smem>>
      %c0_251 = arith.constant 0 : index
      %c0_252 = arith.constant 0 : index
      %c53_253 = arith.constant 53 : index
      %537 = vector.load %arg6[%c0_251, %c0_252, %c53_253] : memref<1x2x358xf32, #tpu.memory_space<vmem>>, vector<1x1x256xf32>
      %538 = vector.shape_cast %537 : vector<1x1x256xf32> to vector<1x256xf32>
      %539 = vector.broadcast %535 : f32 to vector<1x256xf32>
      %540 = arith.mulf %539, %538 : vector<1x256xf32>
      %541 = arith.addf %534, %540 : vector<1x256xf32>
      %c0_254 = arith.constant 0 : index
      %c1_255 = arith.constant 1 : index
      %c53_256 = arith.constant 53 : index
      %542 = vector.load %arg6[%c0_254, %c1_255, %c53_256] : memref<1x2x358xf32, #tpu.memory_space<vmem>>, vector<1x1x256xf32>
      %543 = vector.shape_cast %542 : vector<1x1x256xf32> to vector<1x256xf32>
      %544 = vector.broadcast %536 : f32 to vector<1x256xf32>
      %545 = arith.mulf %544, %543 : vector<1x256xf32>
      %546 = arith.addf %541, %545 : vector<1x256xf32>
      %c33_257 = arith.constant 33 : index
      %547 = memref.load %arg2[%c33_257] : memref<99xf32, #tpu.memory_space<smem>>
      %c82_258 = arith.constant 82 : index
      %548 = memref.load %arg2[%c82_258] : memref<99xf32, #tpu.memory_space<smem>>
      %c0_259 = arith.constant 0 : index
      %c0_260 = arith.constant 0 : index
      %c69 = arith.constant 69 : index
      %549 = vector.load %arg6[%c0_259, %c0_260, %c69] : memref<1x2x358xf32, #tpu.memory_space<vmem>>, vector<1x1x256xf32>
      %550 = vector.shape_cast %549 : vector<1x1x256xf32> to vector<1x256xf32>
      %551 = vector.broadcast %547 : f32 to vector<1x256xf32>
      %552 = arith.mulf %551, %550 : vector<1x256xf32>
      %553 = arith.addf %546, %552 : vector<1x256xf32>
      %c0_261 = arith.constant 0 : index
      %c1_262 = arith.constant 1 : index
      %c69_263 = arith.constant 69 : index
      %554 = vector.load %arg6[%c0_261, %c1_262, %c69_263] : memref<1x2x358xf32, #tpu.memory_space<vmem>>, vector<1x1x256xf32>
      %555 = vector.shape_cast %554 : vector<1x1x256xf32> to vector<1x256xf32>
      %556 = vector.broadcast %548 : f32 to vector<1x256xf32>
      %557 = arith.mulf %556, %555 : vector<1x256xf32>
      %558 = arith.addf %553, %557 : vector<1x256xf32>
      %c40 = arith.constant 40 : index
      %559 = memref.load %arg2[%c40] : memref<99xf32, #tpu.memory_space<smem>>
      %c89 = arith.constant 89 : index
      %560 = memref.load %arg2[%c89] : memref<99xf32, #tpu.memory_space<smem>>
      %c0_264 = arith.constant 0 : index
      %c0_265 = arith.constant 0 : index
      %c85_266 = arith.constant 85 : index
      %561 = vector.load %arg6[%c0_264, %c0_265, %c85_266] : memref<1x2x358xf32, #tpu.memory_space<vmem>>, vector<1x1x256xf32>
      %562 = vector.shape_cast %561 : vector<1x1x256xf32> to vector<1x256xf32>
      %563 = vector.broadcast %559 : f32 to vector<1x256xf32>
      %564 = arith.mulf %563, %562 : vector<1x256xf32>
      %565 = arith.addf %558, %564 : vector<1x256xf32>
      %c0_267 = arith.constant 0 : index
      %c1_268 = arith.constant 1 : index
      %c85_269 = arith.constant 85 : index
      %566 = vector.load %arg6[%c0_267, %c1_268, %c85_269] : memref<1x2x358xf32, #tpu.memory_space<vmem>>, vector<1x1x256xf32>
      %567 = vector.shape_cast %566 : vector<1x1x256xf32> to vector<1x256xf32>
      %568 = vector.broadcast %560 : f32 to vector<1x256xf32>
      %569 = arith.mulf %568, %567 : vector<1x256xf32>
      %570 = arith.addf %565, %569 : vector<1x256xf32>
      %c47 = arith.constant 47 : index
      %571 = memref.load %arg2[%c47] : memref<99xf32, #tpu.memory_space<smem>>
      %c96_270 = arith.constant 96 : index
      %572 = memref.load %arg2[%c96_270] : memref<99xf32, #tpu.memory_space<smem>>
      %c0_271 = arith.constant 0 : index
      %c0_272 = arith.constant 0 : index
      %c101 = arith.constant 101 : index
      %573 = vector.load %arg6[%c0_271, %c0_272, %c101] : memref<1x2x358xf32, #tpu.memory_space<vmem>>, vector<1x1x256xf32>
      %574 = vector.shape_cast %573 : vector<1x1x256xf32> to vector<1x256xf32>
      %575 = vector.broadcast %571 : f32 to vector<1x256xf32>
      %576 = arith.mulf %575, %574 : vector<1x256xf32>
      %577 = arith.addf %570, %576 : vector<1x256xf32>
      %c0_273 = arith.constant 0 : index
      %c1_274 = arith.constant 1 : index
      %c101_275 = arith.constant 101 : index
      %578 = vector.load %arg6[%c0_273, %c1_274, %c101_275] : memref<1x2x358xf32, #tpu.memory_space<vmem>>, vector<1x1x256xf32>
      %579 = vector.shape_cast %578 : vector<1x1x256xf32> to vector<1x256xf32>
      %580 = vector.broadcast %572 : f32 to vector<1x256xf32>
      %581 = arith.mulf %580, %579 : vector<1x256xf32>
      %582 = arith.addf %577, %581 : vector<1x256xf32>
      %c-2_i32 = arith.constant -2 : i32
      %583 = vector.broadcast %c-2_i32 : i32 to vector<1x256xi32>
      %584 = arith.cmpi sge, %30, %583 : vector<1x256xi32>
      %c14_i32 = arith.constant 14 : i32
      %585 = vector.broadcast %c14_i32 : i32 to vector<1x256xi32>
      %586 = arith.cmpi slt, %30, %585 : vector<1x256xi32>
      %587 = arith.andi %584, %586 : vector<1x256xi1>
      %cst_276 = arith.constant 0.000000e+00 : f32
      %588 = vector.broadcast %cst_276 : f32 to vector<1x256xf32>
      %589 = arith.select %587, %582, %588 : vector<1x256xi1>, vector<1x256xf32>
      %590 = arith.addf %497, %589 : vector<1x256xf32>
      %cst_277 = arith.constant 0.000000e+00 : f32
      %591 = vector.broadcast %cst_277 : f32 to vector<1x256xf32>
      %c6 = arith.constant 6 : index
      %592 = memref.load %arg2[%c6] : memref<99xf32, #tpu.memory_space<smem>>
      %c55 = arith.constant 55 : index
      %593 = memref.load %arg2[%c55] : memref<99xf32, #tpu.memory_space<smem>>
      %c0_278 = arith.constant 0 : index
      %c0_279 = arith.constant 0 : index
      %c6_280 = arith.constant 6 : index
      %594 = vector.load %arg6[%c0_278, %c0_279, %c6_280] : memref<1x2x358xf32, #tpu.memory_space<vmem>>, vector<1x1x256xf32>
      %595 = vector.shape_cast %594 : vector<1x1x256xf32> to vector<1x256xf32>
      %596 = vector.broadcast %592 : f32 to vector<1x256xf32>
      %597 = arith.mulf %596, %595 : vector<1x256xf32>
      %598 = arith.addf %591, %597 : vector<1x256xf32>
      %c0_281 = arith.constant 0 : index
      %c1_282 = arith.constant 1 : index
      %c6_283 = arith.constant 6 : index
      %599 = vector.load %arg6[%c0_281, %c1_282, %c6_283] : memref<1x2x358xf32, #tpu.memory_space<vmem>>, vector<1x1x256xf32>
      %600 = vector.shape_cast %599 : vector<1x1x256xf32> to vector<1x256xf32>
      %601 = vector.broadcast %593 : f32 to vector<1x256xf32>
      %602 = arith.mulf %601, %600 : vector<1x256xf32>
      %603 = arith.addf %598, %602 : vector<1x256xf32>
      %c13 = arith.constant 13 : index
      %604 = memref.load %arg2[%c13] : memref<99xf32, #tpu.memory_space<smem>>
      %c62 = arith.constant 62 : index
      %605 = memref.load %arg2[%c62] : memref<99xf32, #tpu.memory_space<smem>>
      %c0_284 = arith.constant 0 : index
      %c0_285 = arith.constant 0 : index
      %c22_286 = arith.constant 22 : index
      %606 = vector.load %arg6[%c0_284, %c0_285, %c22_286] : memref<1x2x358xf32, #tpu.memory_space<vmem>>, vector<1x1x256xf32>
      %607 = vector.shape_cast %606 : vector<1x1x256xf32> to vector<1x256xf32>
      %608 = vector.broadcast %604 : f32 to vector<1x256xf32>
      %609 = arith.mulf %608, %607 : vector<1x256xf32>
      %610 = arith.addf %603, %609 : vector<1x256xf32>
      %c0_287 = arith.constant 0 : index
      %c1_288 = arith.constant 1 : index
      %c22_289 = arith.constant 22 : index
      %611 = vector.load %arg6[%c0_287, %c1_288, %c22_289] : memref<1x2x358xf32, #tpu.memory_space<vmem>>, vector<1x1x256xf32>
      %612 = vector.shape_cast %611 : vector<1x1x256xf32> to vector<1x256xf32>
      %613 = vector.broadcast %605 : f32 to vector<1x256xf32>
      %614 = arith.mulf %613, %612 : vector<1x256xf32>
      %615 = arith.addf %610, %614 : vector<1x256xf32>
      %c20_290 = arith.constant 20 : index
      %616 = memref.load %arg2[%c20_290] : memref<99xf32, #tpu.memory_space<smem>>
      %c69_291 = arith.constant 69 : index
      %617 = memref.load %arg2[%c69_291] : memref<99xf32, #tpu.memory_space<smem>>
      %c0_292 = arith.constant 0 : index
      %c0_293 = arith.constant 0 : index
      %c38_294 = arith.constant 38 : index
      %618 = vector.load %arg6[%c0_292, %c0_293, %c38_294] : memref<1x2x358xf32, #tpu.memory_space<vmem>>, vector<1x1x256xf32>
      %619 = vector.shape_cast %618 : vector<1x1x256xf32> to vector<1x256xf32>
      %620 = vector.broadcast %616 : f32 to vector<1x256xf32>
      %621 = arith.mulf %620, %619 : vector<1x256xf32>
      %622 = arith.addf %615, %621 : vector<1x256xf32>
      %c0_295 = arith.constant 0 : index
      %c1_296 = arith.constant 1 : index
      %c38_297 = arith.constant 38 : index
      %623 = vector.load %arg6[%c0_295, %c1_296, %c38_297] : memref<1x2x358xf32, #tpu.memory_space<vmem>>, vector<1x1x256xf32>
      %624 = vector.shape_cast %623 : vector<1x1x256xf32> to vector<1x256xf32>
      %625 = vector.broadcast %617 : f32 to vector<1x256xf32>
      %626 = arith.mulf %625, %624 : vector<1x256xf32>
      %627 = arith.addf %622, %626 : vector<1x256xf32>
      %c27 = arith.constant 27 : index
      %628 = memref.load %arg2[%c27] : memref<99xf32, #tpu.memory_space<smem>>
      %c76 = arith.constant 76 : index
      %629 = memref.load %arg2[%c76] : memref<99xf32, #tpu.memory_space<smem>>
      %c0_298 = arith.constant 0 : index
      %c0_299 = arith.constant 0 : index
      %c54_300 = arith.constant 54 : index
      %630 = vector.load %arg6[%c0_298, %c0_299, %c54_300] : memref<1x2x358xf32, #tpu.memory_space<vmem>>, vector<1x1x256xf32>
      %631 = vector.shape_cast %630 : vector<1x1x256xf32> to vector<1x256xf32>
      %632 = vector.broadcast %628 : f32 to vector<1x256xf32>
      %633 = arith.mulf %632, %631 : vector<1x256xf32>
      %634 = arith.addf %627, %633 : vector<1x256xf32>
      %c0_301 = arith.constant 0 : index
      %c1_302 = arith.constant 1 : index
      %c54_303 = arith.constant 54 : index
      %635 = vector.load %arg6[%c0_301, %c1_302, %c54_303] : memref<1x2x358xf32, #tpu.memory_space<vmem>>, vector<1x1x256xf32>
      %636 = vector.shape_cast %635 : vector<1x1x256xf32> to vector<1x256xf32>
      %637 = vector.broadcast %629 : f32 to vector<1x256xf32>
      %638 = arith.mulf %637, %636 : vector<1x256xf32>
      %639 = arith.addf %634, %638 : vector<1x256xf32>
      %c34_304 = arith.constant 34 : index
      %640 = memref.load %arg2[%c34_304] : memref<99xf32, #tpu.memory_space<smem>>
      %c83_305 = arith.constant 83 : index
      %641 = memref.load %arg2[%c83_305] : memref<99xf32, #tpu.memory_space<smem>>
      %c0_306 = arith.constant 0 : index
      %c0_307 = arith.constant 0 : index
      %c70_308 = arith.constant 70 : index
      %642 = vector.load %arg6[%c0_306, %c0_307, %c70_308] : memref<1x2x358xf32, #tpu.memory_space<vmem>>, vector<1x1x256xf32>
      %643 = vector.shape_cast %642 : vector<1x1x256xf32> to vector<1x256xf32>
      %644 = vector.broadcast %640 : f32 to vector<1x256xf32>
      %645 = arith.mulf %644, %643 : vector<1x256xf32>
      %646 = arith.addf %639, %645 : vector<1x256xf32>
      %c0_309 = arith.constant 0 : index
      %c1_310 = arith.constant 1 : index
      %c70_311 = arith.constant 70 : index
      %647 = vector.load %arg6[%c0_309, %c1_310, %c70_311] : memref<1x2x358xf32, #tpu.memory_space<vmem>>, vector<1x1x256xf32>
      %648 = vector.shape_cast %647 : vector<1x1x256xf32> to vector<1x256xf32>
      %649 = vector.broadcast %641 : f32 to vector<1x256xf32>
      %650 = arith.mulf %649, %648 : vector<1x256xf32>
      %651 = arith.addf %646, %650 : vector<1x256xf32>
      %c41 = arith.constant 41 : index
      %652 = memref.load %arg2[%c41] : memref<99xf32, #tpu.memory_space<smem>>
      %c90 = arith.constant 90 : index
      %653 = memref.load %arg2[%c90] : memref<99xf32, #tpu.memory_space<smem>>
      %c0_312 = arith.constant 0 : index
      %c0_313 = arith.constant 0 : index
      %c86_314 = arith.constant 86 : index
      %654 = vector.load %arg6[%c0_312, %c0_313, %c86_314] : memref<1x2x358xf32, #tpu.memory_space<vmem>>, vector<1x1x256xf32>
      %655 = vector.shape_cast %654 : vector<1x1x256xf32> to vector<1x256xf32>
      %656 = vector.broadcast %652 : f32 to vector<1x256xf32>
      %657 = arith.mulf %656, %655 : vector<1x256xf32>
      %658 = arith.addf %651, %657 : vector<1x256xf32>
      %c0_315 = arith.constant 0 : index
      %c1_316 = arith.constant 1 : index
      %c86_317 = arith.constant 86 : index
      %659 = vector.load %arg6[%c0_315, %c1_316, %c86_317] : memref<1x2x358xf32, #tpu.memory_space<vmem>>, vector<1x1x256xf32>
      %660 = vector.shape_cast %659 : vector<1x1x256xf32> to vector<1x256xf32>
      %661 = vector.broadcast %653 : f32 to vector<1x256xf32>
      %662 = arith.mulf %661, %660 : vector<1x256xf32>
      %663 = arith.addf %658, %662 : vector<1x256xf32>
      %c48_318 = arith.constant 48 : index
      %664 = memref.load %arg2[%c48_318] : memref<99xf32, #tpu.memory_space<smem>>
      %c97_319 = arith.constant 97 : index
      %665 = memref.load %arg2[%c97_319] : memref<99xf32, #tpu.memory_space<smem>>
      %c0_320 = arith.constant 0 : index
      %c0_321 = arith.constant 0 : index
      %c102 = arith.constant 102 : index
      %666 = vector.load %arg6[%c0_320, %c0_321, %c102] : memref<1x2x358xf32, #tpu.memory_space<vmem>>, vector<1x1x256xf32>
      %667 = vector.shape_cast %666 : vector<1x1x256xf32> to vector<1x256xf32>
      %668 = vector.broadcast %664 : f32 to vector<1x256xf32>
      %669 = arith.mulf %668, %667 : vector<1x256xf32>
      %670 = arith.addf %663, %669 : vector<1x256xf32>
      %c0_322 = arith.constant 0 : index
      %c1_323 = arith.constant 1 : index
      %c102_324 = arith.constant 102 : index
      %671 = vector.load %arg6[%c0_322, %c1_323, %c102_324] : memref<1x2x358xf32, #tpu.memory_space<vmem>>, vector<1x1x256xf32>
      %672 = vector.shape_cast %671 : vector<1x1x256xf32> to vector<1x256xf32>
      %673 = vector.broadcast %665 : f32 to vector<1x256xf32>
      %674 = arith.mulf %673, %672 : vector<1x256xf32>
      %675 = arith.addf %670, %674 : vector<1x256xf32>
      %c-3_i32 = arith.constant -3 : i32
      %676 = vector.broadcast %c-3_i32 : i32 to vector<1x256xi32>
      %677 = arith.cmpi sge, %30, %676 : vector<1x256xi32>
      %c13_i32 = arith.constant 13 : i32
      %678 = vector.broadcast %c13_i32 : i32 to vector<1x256xi32>
      %679 = arith.cmpi slt, %30, %678 : vector<1x256xi32>
      %680 = arith.andi %677, %679 : vector<1x256xi1>
      %cst_325 = arith.constant 0.000000e+00 : f32
      %681 = vector.broadcast %cst_325 : f32 to vector<1x256xf32>
      %682 = arith.select %680, %675, %681 : vector<1x256xi1>, vector<1x256xf32>
      %683 = arith.addf %590, %682 : vector<1x256xf32>
      %684 = arith.negf %683 : vector<1x256xf32>
      %685 = math.exp %684 : vector<1x256xf32>
      %cst_326 = arith.constant 1.000000e+00 : f32
      %686 = vector.broadcast %cst_326 : f32 to vector<1x256xf32>
      %687 = arith.addf %686, %685 : vector<1x256xf32>
      %688 = arith.divf %686, %687 : vector<1x256xf32>
      %c0_327 = arith.constant 0 : index
      %c0_328 = arith.constant 0 : index
      %c0_329 = arith.constant 0 : index
      %689 = vector.load %arg4[%c0_327, %c0_328, %c0_329] : memref<1x1x256xf32, #tpu.memory_space<vmem>>, vector<1x1x256xf32>
      %690 = vector.shape_cast %689 : vector<1x1x256xf32> to vector<1x256xf32>
      %691 = vector.shape_cast %688 : vector<1x256xf32> to vector<1x1x256xf32>
      tpu.vector_store %arg4[%c0_327, %c0_328, %c0_329], %691 {strides = array<i32>} : memref<1x1x256xf32, #tpu.memory_space<vmem>>, vector<1x1x256xf32>,
    } else {
    }
    return
  }
  func.func @transform_0(%arg0: i32, %arg1: i32, %arg2: memref<99xf32, #tpu.memory_space<smem>>) -> (i32, i32, i32) {
    %c0_i32 = arith.constant 0 : i32
    %c0_i32_0 = arith.constant 0 : i32
    return %arg0, %arg1, %c0_i32 : i32, i32, i32
  }
  func.func @transform_1(%arg0: i32, %arg1: i32, %arg2: memref<99xf32, #tpu.memory_space<smem>>) -> (i32, i32, i32) {
    %c0_i32 = arith.constant 0 : i32
    %c0_i32_0 = arith.constant 0 : i32
    %c0_i32_1 = arith.constant 0 : i32
    return %arg0, %c0_i32, %c0_i32_0 : i32, i32, i32
  }
}

</mosaic_0001>

<bundles_post_ra>
// kernel: tpu_custom_call.1
= control target key start
LH: loop header
LB: loop body
LE: loop exit
PB: predicated region body
PF: predicated region fallthrough
CT: control target
= control target key end

     0   :  { %s2755_s0 = inlined_call_operand.hbm [shape: f32[99], index: 0, kind: input, shape index: {}]   ;;  %s2756_s1 = inlined_call_operand.hbm [shape: f32[2,4,256], index: 1, kind: input, shape index: {}]   ;;  %s2757_s2 = inlined_call_operand.hbm [shape: f32[2,1,256], index: 2, kind: output, shape index: {}]  }
   0x1   :  { %2763 = sst [smem:[#allocation13_spill]] %s2756_s1  ;;  %s1802_s11 = scalar_lea.hbm %s2755_s0, 16 }
   0x2   :  { %p1803_p0 = scmp.ne.s32.totalorder %s2755_s0, %s1802_s11  ;;  %p1806_p1 = scmp.lt.u32.totalorder %s1802_s11, %s2755_s0 }
   0x4   :  { %p1808_p2 = pnand %p1806_p1, %p1803_p0 }
   0x6   :  { %1811 = shalt.err (!%p1808_p2)  }
   0x7   :  { %s1928_s16 = smov [#allocation5]  }
   0x8   :  { %8 = dma.hbm_to_smem %s2755_s0, 16, %s1928_s16, [#allocation4] }
   0x9   :  { %1894 = dma.done.wait [#allocation4], 16 }
   0xa   :  { %1895 = vsyncadd [#allocation4], 4294967280 }
   0xb   :  { %10 = sfence }
   0xc   :  { %11 = vsyncpa [#allocation7], 0 }
   0xd   :  { %13 = vsyncpa [#allocation7 + $0x1], 0 }
   0xe   :  { %14 = vsyncpa [#allocation8], 0 }
   0xf   :  { %16 = vsyncpa [#allocation8 + $0x1], 0  ;;  %s1973_s19 = smov 0   ;;  %s1975_s20 = smov 0  }
  0x10   :  { %s1977_s21 = smov 0   ;;  %s1979_s22 = smov 0  }
  0x11   :  { %s1981_s23 = smov 0   ;;  %s1983_s24 = smov 0  }
  0x12 LB: > { %s1598_s0 = sadd.s32 4294967295, %s1926_s24   ;;  %s1599_s25 = sadd.s32 4294967294, %s1926_s24   ;;  %s1926_s24 = sphi %s1983_s24, %s22_s24   ;;  %s1922_s23 = sphi %s1981_s23, %s2783_s23   ;;  %s1918_s22 = sphi %s1979_s22, %s2782_s22   ;;  %s1914_s21 = sphi %s1977_s21, %s2781_s21   ;;  %s1910_s20 = sphi %s1975_s20, %s2780_s20   ;;  %s1906_s19 = sphi %s1973_s19, %s2779_s19  }
  0x13   : > { %s34_s26 = sadd.s32 1, %s1922_s23  ;;  %s43_s27 = sadd.s32 1, %s1914_s21 }
  0x14   : > { %p36_p3 = scmp.ge.s32.totalorder %s34_s26, 2  ;;  %p50_p4 = scmp.ne.s32.totalorder %s1914_s21, %s1910_s20 }
  0x15   : > { %p51_p5 = scmp.eq.s32.totalorder %s1926_s24, 0  ;;  %p56_p6 = scmp.ne.s32.totalorder %s1910_s20, %s1906_s19 }
  0x16   : > { %s2785_s26 = smov (%p36_p3, %s34_s26), 0  ;;  %p57_p8 = scmp.eq.s32.totalorder %s1598_s0, 0 }
  0x17   : > { %p2014_p7 = por %p51_p5, %p50_p4  ;;  %s38_s29 = ssub.s32 %s1922_s23, %s2785_s26 }
  0x18   : > { %p80_p9 = scmp.eq.s32.totalorder %s1598_s0, 1  ;;  %p41_p10 = scmp.eq.s32.totalorder %s38_s29, 0 }
  0x19   : > { %p2020_p11 = por %p57_p8, %p56_p6  ;;  %p86_p13 = scmp.eq.s32.totalorder %s1599_s25, 1 }
  0x1a   : > { %p2024_p12 = por %p80_p9, %p50_p4  ;;  %p1727_p2 = scmp.lt.s32.totalorder %s1926_s24, 2 }
  0x1b   : > { %s2029_s4 = scalar_select %p41_p10, %s1914_s21, %s43_s27  }
  0x1c   : > { %s2766_s3 = scalar_select %p2024_p12, 1, 0 }
  0x1d   : > { %p2031_p0 = por %p86_p13, %p56_p6  ;;  %s106_s6 = sand.u32 1, %s1914_s21  }
  0x1e   : > { %s1602_s7 = sshll.u32 %s106_s6, 3  ;;  %s1713_s8 = sshll.u32 %s1922_s23, 7 }
  0x1f   : > { %s2767_s5 = scalar_select %p2031_p0, 1, 0 }
  0x20   : > { %s2768_s1 = sld [smem:[#allocation13_spill]]  ;;  %s110_s12 = scalar_lea.vmem [#allocation6], %s1602_s7 }
  0x21   : > { %s120_s13 = sshll.u32 %s110_s12, 4  ;;  %p2048_p3 = pnand %p1727_p2, %p2014_p7  ;;  %s2044_s13 = int_to_ptr.vmem [resolvable:$true] %s120_s13 }
  0x22   : > { %s107_s15 = scalar_lea.sflag [#allocation7], %s106_s6 }
  0x23   : > { %p1814_p8 = pneg %p2048_p3 }
  0x26   : > { %s2042_s11 = scalar_lea.hbm %s2768_s1, %s1713_s8  ;;  %s1817_s0 = scalar_lea.hbm %s2768_s1, 256 }
  0x27   : > { %s1812_s16 = scalar_lea.hbm %s2042_s11, 128  ;;  %p1818_p7 = scmp.lt.u32.totalorder %s2042_s11, %s2768_s1 }
  0x28   : > { %p1813_p6 = scmp.ne.s32.totalorder %s2042_s11, %s1812_s16  ;;  %p1819_p13 = scmp.lt.u32.totalorder %s1817_s0, %s1812_s16 }
  0x29   : > { %p1821_p1 = scmp.lt.u32.totalorder %s1812_s16, %s2042_s11 }
  0x2a   : > { %p1815_p9 = pnand %p1814_p8, %p1813_p6  ;;  %p1820_p2 = por %p1819_p13, %p1818_p7 }
  0x2c   : > { %p1816_p10 = pneg %p1815_p9  ;;  %p1822_p4 = por %p1821_p1, %p1820_p2 }
  0x2e   : > { %p1823_p5 = pnand %p1822_p4, %p1816_p10 }
  0x30   : > { %1826 = shalt.err (!%p1823_p5)
}
  0x31   : > { %s1827_s28 = scalar_lea.vmem %s2044_s13, 128  ;;  %s1929_s29 = smov [#allocation6]  }
  0x32   : > { %p1828_p6 = scmp.ne.s32.totalorder %s2044_s13, %s1827_s28  ;;  %s1832_s6 = sshll.u32 %s1929_s29, 4  ;;  %s1833_s6 = int_to_ptr.vmem [resolvable:$false] %s1832_s6 }
  0x33   : > { %s1834_s7 = scalar_lea.vmem %s1833_s6, 256  ;;  %p1835_p12 = scmp.lt.s32.totalorder %s2044_s13, %s1833_s6 }
  0x34   : > { %p1830_p9 = pnand %p1828_p6, %p1814_p8  ;;  %p1836_p7 = scmp.lt.s32.totalorder %s1834_s7, %s1827_s28 }
  0x36   : > { %p1831_p0 = pneg %p1830_p9  ;;  %p1837_p13 = por %p1836_p7, %p1835_p12 }
  0x38   : > { %p1838_p1 = pnand %p1837_p13, %p1831_p0 }
  0x3a   : > { %1841 = shalt.err (!%p1838_p1)
}
  0x3b   : > { %1722 = dma.hbm_to_vmem [thread:$0]  (!%p2048_p3), %s2042_s11, 128, %s2044_s13, %s107_s15  }
  0x3c   : > { %p2770_p4 = scmp.lt.s32.totalorder %s1926_s24, 3  ;;  %p2771_p5 = scmp.ge.s32.totalorder %s1926_s24, 1 }
  0x3e   : > { %p126_p8 = pnand %p2771_p5, %p2770_p4 }
  0x3f   : > { %s2084_s8 = sand.u32 (!%p126_p8), 1, %s1910_s20  }
  0x40   : > { %129 = sbr.rel (%p126_p8) target bundleno = 678 (0x2a6), region = 24  ;;  %s1606_s9 = sshll.u32 (!%p126_p8), %s2084_s8, 3 }
  0x41   : > { %s132_s10 = scalar_lea.sflag (!%p126_p8), [#allocation7], %s2084_s8  ;;  %s135_s12 = scalar_lea.vmem (!%p126_p8), [#allocation6], %s1606_s9 }
  0x47   : > { %1897 = dma.done.wait (%p2020_p11), %s132_s10, 128  }
  0x48   : > { %1899 = vsyncadd (%p2020_p11), %s132_s10, 4294967168  ;;  %vm234_vm0 = vcmask 410624   ;;  %vm236_vm1 = vcmask 828824   ;;  %v1930_v0 = vmov 0.0   ;;  %vm158_vm2 = vcmask 1043456   ;;  %v154_v1 = vld [vmem:[%s135_s12] sm:$0xff] }
  0x49   : > { %235 = vst.msk [vmem:[#allocation3] sm:$0x3] %vm234_vm0, %v1930_v0  ;;  %v156_v2 = vcombine.high %v154_v1, %v154_v1  ;;  %v159_v3 = vsel %vm158_vm2, %v154_v1, 0.0  ;;  %v173_v4 = vsel %vm158_vm2, %v154_v1, -inf  ;;  %v1931_v13 = vmov 1966171168  }
  0x4a   : > { %237 = vst.msk [vmem:[#allocation3 + $0x4] sm:$0x3] %vm236_vm1, %v1930_v0  ;;  %v160_v5 = vrot.slane %v159_v3, 4  ;;  %v174_v6 = vrot.slane %v173_v4, 4  ;;  %v195_v14 = vunpack.c.l.s4 %v1931_v13  ;;  %v197_v15 = vlaneseq  ;;  %s1932_s30 = smov 51   ;;  %s1611_s11 = sld [smem:[#allocation5 + $0x38]] }
  0x4b   : > { %v166_v7 = vsel %vm158_vm2, %v156_v2, 0.0  ;;  %v180_v8 = vsel %vm158_vm2, %v156_v2, -inf  ;;  %vm300_vm4 = vcmask 1041816   ;;  %vm301_vm5 = vcmask 1043458   ;;  %s1610_s13 = sld [smem:[#allocation5 + $0x7]]  ;;  %s1612_s14 = sld [smem:[#allocation5 + $0xe]] }
  0x4c   : > { %v161_v9 = vadd.f32 %v160_v5, %v159_v3  ;;  %v167_v10 = vrot.slane %v166_v7, 4  ;;  %v175_v11 = vmax.f32 %v173_v4, %v174_v6  ;;  %v181_v12 = vrot.slane %v180_v8, 4  ;;  %vm302_vm6 = vmor %vm301_vm5, %vm300_vm4  ;;  %s1613_s15 = sld [smem:[#allocation5 + $0x3f]]  ;;  %s1614_s16 = sld [smem:[#allocation5 + $0x15]] }
  0x4d   : > { %v196_v24 = vunpack.c.0.s8 %v195_v14  ;;  %v2093_v25 = vshrl.u32 %v197_v15, 7  ;;  %vm2101_vm3 = vcmp.lt.s32.totalorder %v197_v15, 256  ;;  %vm303_vm7 = vcmask 414724   ;;  %s1615_s17 = sld [smem:[#allocation5 + $0x46]]  ;;  %s2117_s18 = sld [smem:[#allocation5 + $0x8]] }
  0x4e   : > { %v162_v16 = vrot.slane %v161_v9, 2  ;;  %v168_v17 = vadd.f32 %v167_v10, %v166_v7  ;;  %v176_v18 = vrot.slane %v175_v11, 2  ;;  %v182_v19 = vmax.f32 %v180_v8, %v181_v12  ;;  %vm304_vm9 = vmor %vm303_vm7, %vm302_vm6  ;;  %s2119_s0 = sld [smem:[#allocation5 + $0x39]]  ;;  %s1933_s25 = smov 112  }
  0x4f   : > { %v2096_v36 = vsub.s32 %v196_v24, %v2093_v25  ;;  %vm297_vm8 = vcmask 416768   ;;  %s2125_s27 = sld [smem:[#allocation5 + $0x9]]  ;;  %s2127_s28 = sld [smem:[#allocation5 + $0xf]]  ;;  %vm355_vm10 = vcmask 916480   ;;  %vm377_vm11 = vcmask 785408  }
  0x50   : > { %v163_v20 = vadd.f32 %v162_v16, %v161_v9  ;;  %v169_v21 = vrot.slane %v168_v17, 2  ;;  %v177_v22 = vmax.f32 %v175_v11, %v176_v18  ;;  %v183_v23 = vrot.slane %v182_v19, 2  ;;  %s2129_s29 = sld [smem:[#allocation5 + $0x3a]]  ;;  %s2761_s6 = smov 96  }
  0x51   : > { %v360_v48 = vstv %s1611_s11  ;;  %v349_v49 = vstv %s1610_s13  ;;  %v371_v54 = vstv %s1612_s14  ;;  %s2133_s7 = sld [smem:[#allocation5 + $0xa]]  ;;  %s2135_s9 = sld [smem:[#allocation5 + $0x1]]  ;;  %vm398_vm12 = vcmask 654336  }
  0x52   : > { %v164_v26 = vrot.slane %v163_v20, 1  ;;  %v170_v27 = vadd.f32 %v169_v21, %v168_v17  ;;  %v178_v28 = vrot.slane %v177_v22, 1  ;;  %v184_v29 = vmax.f32 %v182_v19, %v183_v23  ;;  %s2137_s10 = sld [smem:[#allocation5 + $0x32]]  ;;  %s2147_s11 = sld [smem:[#allocation5 + $0x3]] }
  0x53   : > { %v381_v55 = vstv %s1613_s15  ;;  %v392_v58 = vstv %s1614_s16  ;;  %v402_v59 = vstv %s1615_s17  ;;  %s2141_s12 = sld [smem:[#allocation5 + $0x2]]  ;;  %v505_v62 = vstv %s2117_s18  ;;  %s2149_s13 = sld [smem:[#allocation5 + $0x34]] }
  0x54   : > { %v165_v30 = vadd.f32 %v164_v26, %v163_v20  ;;  %v171_v31 = vrot.slane %v170_v27, 1  ;;  %v179_v32 = vmax.f32 %v177_v22, %v178_v28  ;;  %v185_v33 = vrot.slane %v184_v29, 1  ;;  %s2759_s14 = smov 80   ;;  %s2153_s15 = sld [smem:[#allocation5 + $0x40]] }
  0x55   : > { %v514_v63 = vstv %s2119_s0  ;;  %s2155_s16 = sld [smem:[#allocation5 + $0x4]]  ;;  %s2157_s17 = sld [smem:[#allocation5 + $0x35]]  ;;  %v667_v2 = vstv %s2125_s27  ;;  %v525_v3 = vstv %s2127_s28  ;;  %vm419_vm13 = vcmask 523264  }
  0x56   : > { %v172_v34 = vadd.f32 %v171_v31, %v170_v27  ;;  %v186_v35 = vmax.f32 %v184_v29, %v185_v33  ;;  %s2161_s18 = sld [smem:[#allocation5 + $0x10]]  ;;  %s2165_s0 = sld [smem:[#allocation5 + $0x5]]  ;;  %v676_v5 = vstv %s2129_s29  ;;  %vm440_vm14 = vcmask 392192  }
  0x57   : > { %v497_v4 = vstv %s2135_s9  ;;  %s2176_s1 = sld [smem:[#allocation5 + $0x37]]  ;;  %v829_v11 = vstv %s2133_s7  ;;  %s2183_s27 = sld [smem:[#allocation5 + $0xb]]  ;;  %vm461_vm15 = vcmask 261120   ;;  %vm648_vm0 = vcmask 1039360  }
  0x58   : > { %v193_v37 = vcombine.low %v165_v30, %v172_v34  ;;  %v216_v38 = vcombine.low %v179_v32, %v186_v35  ;;  %v500_v6 = vstv %s2137_s10  ;;  %s2185_s28 = sld [smem:[#allocation5 + $0x3b]]  ;;  %v821_v13 = vstv %s2147_s11  ;;  %s2774_s29 = smov 96  }
  0x59   : > { %v659_v9 = vstv %s2141_s12  ;;  %v824_v14 = vstv %s2149_s13  ;;  %s2205_s7 = sld [smem:[#allocation5 + $0x16]]  ;;  %s2207_s9 = sld [smem:[#allocation5 + $0x41]]  ;;  %vm810_vm4 = vcmask 1031168  }
  0x5a   : > { %v200_v39 = vrot.slane %v193_v37, %v2096_v36  ;;  %v223_v40 = vrot.slane %v216_v38, %v2096_v36  ;;  %v534_v16 = vstv %s2153_s15  ;;  %s1667_s10 = sld [smem:[#allocation5 + $0x3c]]  ;;  %s1668_s11 = sld [smem:[#allocation5 + $0x12]] }
  0x5b   : > { %v983_v18 = vstv %s2155_s16  ;;  %v986_v22 = vstv %s2157_s17  ;;  %s1680_s12 = sld [smem:[#allocation5 + $0xc]]  ;;  %s2775_s13 = smov 80  }
  0x5c   : > { %v207_v42 = vrot.slane %v200_v39, %v2096_v36  ;;  %v230_v43 = vrot.slane %v223_v40, %v2096_v36  ;;  %v687_v28 = vstv %s2161_s18  ;;  %v1145_v30 = vstv %s2165_s0  ;;  %s1694_s15 = sld [smem:[#allocation5 + $0xd]]  ;;  %s1655_s16 = sld [smem:[#allocation5 + $0x42]] }
  0x5d   : > { %v1310_v38 = vstv %s2176_s1  ;;  %s1654_s1 = sld [smem:[#allocation5 + $0x11]]  ;;  %s1630_s17 = sld [smem:[#allocation5 + $0x1d]] }
  0x5e   : > { %213 = vst.msk [vmem:[#allocation2] ss:$2 sm:$0x3] %vm2101_vm3, %v207_v42  ;;  %233 = vst.msk [vmem:[#allocation2 + $0x1] ss:$2 sm:$0x3] %vm2101_vm3, %v230_v43 }
  0x5f   : > { %s1643_s18 = sld [smem:[#allocation5 + $0x48]]  ;;  %s1669_s0 = sld [smem:[#allocation5 + $0x43]] }
  0x60   : > { %p2776_p12 = scmp.ne.s32.totalorder %s2766_s3, 0 }
  0x65   : > { %v292_v44 = vld [vmem:[#allocation2] sm:$0xf] }
  0x66   : > { %294 = vrot.lane.b32.xlu0 %v292_v44, %s1932_s30  ;;  %s2143_s30 = sld [smem:[#allocation5 + $0x33]]  ;;  %v991_v44 = vstv %s2183_s27 }
  0x67   : > { %s1682_s27 = sld [smem:[#allocation5 + $0x13]] }
  0x6c   : > { %v662_v10 = vstv %s2143_s30  ;;  %s1642_s30 = sld [smem:[#allocation5 + $0x17]] }
  0xd8   : > { %v295_v45 = vpop.permute.xlu0 %294 }
  0xd9   : > { %v296_v46 = vrot.slane %v295_v45, 6 }
  0xdb   : > { %v298_v47 = vsel %vm297_vm8, %v296_v46, %v295_v45  ;;  %v838_v45 = vstv %s2185_s28  ;;  %s1695_s28 = sld [smem:[#allocation5 + $0x3e]] }
  0xdc   : > { %305 = vst.msk [vmem:[#allocation3] sm:$0x3f] %vm304_vm9, %v298_v47  ;;  %vm1134_vm9 = vcmask 1014784  }
  0xe3   : > { %v2111_v50 = vld [vmem:[#allocation3] ss:$2 sm:$0x7]  ;;  %v2113_v51 = vld [vmem:[#allocation3 + $0x1] ss:$2 sm:$0x7] }
  0xe4   : > { %v361_v52 = vmul.f32 %v360_v48, %v2113_v51  ;;  %v350_v53 = vmul.f32 %v349_v49, %v2111_v50  ;;  %v372_v56 = vmul.f32 %v371_v54, %v2111_v50  ;;  %v382_v57 = vmul.f32 %v381_v55, %v2113_v51 }
  0xe5   : > { %v393_v60 = vmul.f32 %v392_v58, %v2111_v50  ;;  %v403_v61 = vmul.f32 %v402_v59, %v2113_v51  ;;  %v506_v0 = vmul.f32 %v505_v62, %v2111_v50  ;;  %v515_v1 = vmul.f32 %v514_v63, %v2113_v51 }
  0xe6   : > { %363 = vrot.lane.b32.xlu1 %v361_v52, %s1933_s25  ;;  %352 = vrot.lane.b32.xlu0 %v350_v53, %s1933_s25  ;;  %v668_v7 = vmul.f32 %v667_v2, %v2111_v50  ;;  %v526_v8 = vmul.f32 %v525_v3, %v2111_v50  ;;  %v498_v12 = vmul.f32 %v497_v4, %v2111_v50  ;;  %v545_v53 = vstv %s2205_s7  ;;  %s1656_s7 = sld [smem:[#allocation5 + $0x18]] }
  0xe7   : > { %v501_v17 = vmul.f32 %v500_v6, %v2113_v51  ;;  %v677_v19 = vmul.f32 %v676_v5, %v2113_v51  ;;  %v660_v20 = vmul.f32 %v659_v9, %v2111_v50  ;;  %v663_v21 = vmul.f32 %v662_v10, %v2113_v51 }
  0xe8   : > { %v830_v23 = vmul.f32 %v829_v11, %v2111_v50  ;;  %v822_v26 = vmul.f32 %v821_v13, %v2111_v50  ;;  %v825_v27 = vmul.f32 %v824_v14, %v2113_v51  ;;  %v984_v33 = vmul.f32 %v983_v18, %v2111_v50 }
  0xe9   : > { %v2200_v24 = vadd.f32 %v501_v17, %v498_v12  ;;  %v2209_v29 = vadd.f32 %v663_v21, %v660_v20  ;;  %v987_v34 = vmul.f32 %v986_v22, %v2113_v51  ;;  %v535_v35 = vmul.f32 %v534_v16, %v2113_v51 }
  0xea   : > { %374 = vrot.lane.b32.xlu1 %v372_v56, %s2761_s6  ;;  %384 = vrot.lane.b32.xlu0 %v382_v57, %s2761_s6  ;;  %s2174_s6 = sld [smem:[#allocation5 + $0x6]]  ;;  %v2215_v32 = vadd.f32 %v825_v27, %v822_v26  ;;  %v688_v39 = vmul.f32 %v687_v28, %v2111_v50  ;;  %v1146_v42 = vmul.f32 %v1145_v30, %v2111_v50  ;;  %v696_v54 = vstv %s2207_s9 }
  0xeb   : > { %v2223_v40 = vadd.f32 %v987_v34, %v984_v33  ;;  %v1311_v48 = vmul.f32 %v1310_v38, %v2113_v51  ;;  %v992_v49 = vmul.f32 %v991_v44, %v2111_v50  ;;  %v839_v52 = vmul.f32 %v838_v45, %v2113_v51  ;;  %s1631_s9 = sld [smem:[#allocation5 + $0x4e]] }
  0xec   : > { %v546_v56 = vmul.f32 %v545_v53, %v2111_v50  ;;  %v697_v57 = vmul.f32 %v696_v54, %v2113_v51  ;;  %v1000_v58 = vstv %s1667_s10  ;;  %v1153_v59 = vstv %s1680_s12  ;;  %s1936_s10 = smov 64   ;;  %s1644_s12 = sld [smem:[#allocation5 + $0x1e]] }
  0xed   : > { %v849_v62 = vstv %s1654_s1  ;;  %v707_v2 = vstv %s1642_s30  ;;  %v1011_v3 = vstv %s1668_s11  ;;  %v858_v10 = vstv %s1655_s16  ;;  %s1670_s1 = sld [smem:[#allocation5 + $0x19]]  ;;  %s1696_s30 = sld [smem:[#allocation5 + $0x14]] }
  0xee   : > { %395 = vrot.lane.b32.xlu1 %v393_v60, %s2759_s14  ;;  %405 = vrot.lane.b32.xlu0 %v403_v61, %s2759_s14  ;;  %s2167_s14 = sld [smem:[#allocation5 + $0x36]]  ;;  %v1001_v60 = vmul.f32 %v1000_v58, %v2113_v51  ;;  %v1154_v61 = vmul.f32 %v1153_v59, %v2111_v50  ;;  %v708_v4 = vmul.f32 %v707_v2, %v2111_v50  ;;  %v565_v11 = vstv %s1630_s17  ;;  %s1657_s11 = sld [smem:[#allocation5 + $0x49]] }
  0xef   : > { %v1012_v5 = vmul.f32 %v1011_v3, %v2111_v50  ;;  %v859_v12 = vmul.f32 %v858_v10, %v2113_v51  ;;  %v566_v13 = vmul.f32 %v565_v11, %v2111_v50  ;;  %v716_v14 = vstv %s1643_s18  ;;  %s1684_s16 = sld [smem:[#allocation5 + $0x1a]]  ;;  %s1697_s17 = sld [smem:[#allocation5 + $0x45]] }
  0xf0   : > { %v1307_v37 = vstv %s2174_s6  ;;  %s1629_s6 = sld [smem:[#allocation5 + $0x47]]  ;;  %v1020_v16 = vstv %s1669_s0  ;;  %v717_v17 = vmul.f32 %v716_v14, %v2113_v51  ;;  %v1324_v20 = vstv %s1695_s28  ;;  %s1633_s0 = sld [smem:[#allocation5 + $0x55]] }
  0xf1   : > { %v1308_v47 = vmul.f32 %v1307_v37, %v2111_v50  ;;  %v1021_v18 = vmul.f32 %v1020_v16, %v2113_v51  ;;  %v1325_v22 = vmul.f32 %v1324_v20, %v2113_v51  ;;  %v574_v26 = vstv %s1631_s9  ;;  %s1658_s18 = sld [smem:[#allocation5 + $0x1f]]  ;;  %s1646_s28 = sld [smem:[#allocation5 + $0x25]] }
  0xf2   : > { %508 = vrot.lane.b32.xlu1 %v506_v0, %s1933_s25  ;;  %517 = vrot.lane.b32.xlu0 %v515_v1, %s1933_s25  ;;  %v850_v0 = vmul.f32 %v849_v62, %v2111_v50  ;;  %v575_v28 = vmul.f32 %v574_v26, %v2113_v51  ;;  %v727_v30 = vstv %s1644_s12  ;;  %s1685_s9 = sld [smem:[#allocation5 + $0x4b]]  ;;  %v342_v26 = vld [vmem:[#allocation3 + $0x1] ss:$2 sm:$0x3] }
  0xf3   : > { %v2239_v55 = vadd.f32 %v1311_v48, %v1308_v47  ;;  %v728_v33 = vmul.f32 %v727_v30, %v2111_v50  ;;  %v1335_v37 = vstv %s1696_s30  ;;  %s1698_s12 = sld [smem:[#allocation5 + $0x1b]]  ;;  %s1647_s30 = sld [smem:[#allocation5 + $0x56]] }
  0xf4   : > { %v1148_v31 = vstv %s2167_s14  ;;  %s1681_s14 = sld [smem:[#allocation5 + $0x3d]] }
  0xf5   : > { %v1149_v43 = vmul.f32 %v1148_v31, %v2113_v51  ;;  %v1031_v31 = vstv %s1670_s1  ;;  %v1193_v53 = vstv %s1684_s16  ;;  %v1344_v54 = vstv %s1697_s17  ;;  %s1659_s1 = sld [smem:[#allocation5 + $0x50]]  ;;  %s1938_s16 = smov 32  }
  0xf6   : > { %670 = vrot.lane.b32.xlu1 %v668_v7, %s1933_s25  ;;  %528 = vrot.lane.b32.xlu0 %v526_v8, %s2774_s29  ;;  %v554_v63 = vstv %s1629_s6  ;;  %v1315_v7 = vstv %s1694_s15  ;;  %s1683_s6 = sld [smem:[#allocation5 + $0x44]]  ;;  %v1032_v34 = vmul.f32 %v1031_v31, %v2111_v50  ;;  %s1645_s15 = sld [smem:[#allocation5 + $0x4f]] }
  0xf7   : > { %v2231_v46 = vadd.f32 %v1149_v43, %v1146_v42  ;;  %v555_v1 = vmul.f32 %v554_v63, %v2113_v51  ;;  %v1316_v9 = vmul.f32 %v1315_v7, %v2111_v50  ;;  %v878_v42 = vstv %s1657_s11  ;;  %s1686_s11 = sld [smem:[#allocation5 + $0x21]]  ;;  %s2315_s17 = sld [smem:[#allocation5]] }
  0xf8   : > { %v879_v44 = vmul.f32 %v878_v42, %v2113_v51  ;;  %v889_v58 = vstv %s1658_s18  ;;  %v594_v59 = vstv %s1633_s0  ;;  %v747_v62 = vstv %s1646_s28  ;;  %s1609_s18 = sld [smem:[#allocation5 + $0x31]]  ;;  %s1648_s0 = sld [smem:[#allocation5 + $0x2c]] }
  0xf9   : > { %v1202_v2 = vstv %s1685_s9  ;;  %v1355_v3 = vstv %s1698_s12  ;;  %v756_v10 = vstv %s1647_s30  ;;  %s1674_s28 = sld [smem:[#allocation5 + $0x27]]  ;;  %s2325_s9 = sld [smem:[#allocation5 + $0x22]] }
  0xfa   : > { %679 = vrot.lane.b32.xlu1 %v677_v19, %s1933_s25  ;;  %832 = vrot.lane.b32.xlu0 %v830_v23, %s1933_s25  ;;  %v1162_v6 = vstv %s1681_s14  ;;  %v1173_v19 = vstv %s1682_s27  ;;  %s1632_s14 = sld [smem:[#allocation5 + $0x24]]  ;;  %s1937_s27 = smov 48  }
  0xfb   : > { %v1163_v8 = vmul.f32 %v1162_v6, %v2113_v51  ;;  %v1174_v21 = vmul.f32 %v1173_v19, %v2111_v50  ;;  %v869_v23 = vstv %s1656_s7  ;;  %s1672_s7 = sld [smem:[#allocation5 + $0x20]]  ;;  %v898_v6 = vstv %s1659_s1  ;;  %s2329_s12 = sld [smem:[#allocation5 + $0x57]] }
  0xfc   : > { %v870_v27 = vmul.f32 %v869_v23, %v2111_v50  ;;  %v736_v47 = vstv %s1645_s15  ;;  %s1660_s15 = sld [smem:[#allocation5 + $0x26]]  ;;  %v337_v23 = vld [vmem:[#allocation3] ss:$2 sm:$0x3]  ;;  %s2334_s1 = sld [smem:[#allocation5 + $0x5d]] }
  0xfd   : > { %v1213_v14 = vstv %s1686_s11  ;;  %s2352_s30 = sld [smem:[#allocation5 + $0x53]]  ;;  %s2364_s11 = sld [smem:[#allocation5 + $0x2e]] }
  0xfe   : > { %537 = vrot.lane.b32.xlu1 %v535_v35, %s2774_s29  ;;  %690 = vrot.lane.b32.xlu0 %v688_v39, %s2774_s29  ;;  %v1182_v35 = vstv %s1683_s6  ;;  %v1336_v39 = vmul.f32 %v1335_v37, %v2111_v50  ;;  %s1634_s6 = sld [smem:[#allocation5 + $0x2b]]  ;;  %v767_v30 = vstv %s1648_s0  ;;  %s2406_s0 = sld [smem:[#allocation5 + $0x5a]] }
  0xff   : > { %v1183_v38 = vmul.f32 %v1182_v35, %v2113_v51  ;;  %v1071_v31 = vstv %s1674_s28  ;;  %s2408_s28 = sld [smem:[#allocation5 + $0x60]] }
 0x100   : > { %v585_v43 = vstv %s1632_s14  ;;  %s1699_s14 = sld [smem:[#allocation5 + $0x4c]] }
 0x101   : > { %v586_v45 = vmul.f32 %v585_v43, %v2111_v50  ;;  %v1051_v63 = vstv %s1672_s7  ;;  %s2323_s7 = sld [smem:[#allocation5 + $0x52]] }
 0x102   : > { %994 = vrot.lane.b32.xlu1 %v992_v49, %s1933_s25  ;;  %841 = vrot.lane.b32.xlu0 %v839_v52, %s1933_s25  ;;  %v737_v49 = vmul.f32 %v736_v47, %v2113_v51  ;;  %v909_v19 = vstv %s1660_s15  ;;  %s2378_s15 = sld [smem:[#allocation5 + $0x29]] }
 0x104   : > { %v605_v7 = vstv %s1634_s6  ;;  %s2344_s6 = sld [smem:[#allocation5 + $0x28]] }
 0x106   : > { %548 = vrot.lane.b32.xlu1 %v546_v56, %s2775_s13  ;;  %699 = vrot.lane.b32.xlu0 %v697_v57, %s2774_s29  ;;  %v1194_v56 = vmul.f32 %v1193_v53, %v2111_v50  ;;  %v1345_v57 = vmul.f32 %v1344_v54, %v2113_v51  ;;  %v1364_v16 = vstv %s1699_s14  ;;  %s2368_s14 = sld [smem:[#allocation5 + $0x59]] }
 0x10a   : > { %1003 = vrot.lane.b32.xlu1 %v1001_v60, %s1933_s25  ;;  %1156 = vrot.lane.b32.xlu0 %v1154_v61, %s1933_s25  ;;  %v890_v60 = vmul.f32 %v889_v58, %v2111_v50  ;;  %v595_v61 = vmul.f32 %v594_v59, %v2113_v51 }
 0x10e   : > { %852 = vrot.lane.b32.xlu1 %v850_v0, %s2774_s29  ;;  %557 = vrot.lane.b32.xlu0 %v555_v1, %s2775_s13  ;;  %v748_v0 = vmul.f32 %v747_v62, %v2111_v50  ;;  %v1052_v1 = vmul.f32 %v1051_v63, %v2111_v50 }
 0x112   : > { %710 = vrot.lane.b32.xlu1 %v708_v4, %s2775_s13  ;;  %1014 = vrot.lane.b32.xlu0 %v1012_v5, %s2774_s29  ;;  %v1203_v4 = vmul.f32 %v1202_v2, %v2113_v51  ;;  %v1356_v5 = vmul.f32 %v1355_v3, %v2111_v50 }
 0x116   : > { %1165 = vrot.lane.b32.xlu1 %v1163_v8, %s1933_s25  ;;  %1318 = vrot.lane.b32.xlu0 %v1316_v9, %s1933_s25  ;;  %v899_v8 = vmul.f32 %v898_v6, %v2113_v51  ;;  %v606_v9 = vmul.f32 %v605_v7, %v2111_v50 }
 0x11a   : > { %861 = vrot.lane.b32.xlu1 %v859_v12, %s2774_s29  ;;  %568 = vrot.lane.b32.xlu0 %v566_v13, %s1936_s10  ;;  %v757_v12 = vmul.f32 %v756_v10, %v2113_v51 }
 0x11e   : > { %719 = vrot.lane.b32.xlu1 %v717_v17, %s2775_s13  ;;  %1023 = vrot.lane.b32.xlu0 %v1021_v18, %s2774_s29  ;;  %v1214_v17 = vmul.f32 %v1213_v14, %v2111_v50  ;;  %v1365_v18 = vmul.f32 %v1364_v16, %v2113_v51 }
 0x122   : > { %1176 = vrot.lane.b32.xlu1 %v1174_v21, %s2774_s29  ;;  %1327 = vrot.lane.b32.xlu0 %v1325_v22, %s1933_s25  ;;  %s1671_s25 = sld [smem:[#allocation5 + $0x4a]]  ;;  %v338_v21 = vstv %s2315_s17  ;;  %v343_v22 = vstv %s1609_s18  ;;  %s2393_s17 = sld [smem:[#allocation5 + $0x5f]] }
 0x123   : > { %s2395_s18 = sld [smem:[#allocation5 + $0x2f]] }
 0x126   : > { %872 = vrot.lane.b32.xlu1 %v870_v27, %s2775_s13  ;;  %577 = vrot.lane.b32.xlu0 %v575_v28, %s1936_s10  ;;  %v910_v27 = vmul.f32 %v909_v19, %v2111_v50 }
 0x128   : > { %v1040_v48 = vstv %s1671_s25  ;;  %s1635_s25 = sld [smem:[#allocation5 + $0x5c]] }
 0x129   : > { %v1041_v52 = vmul.f32 %v1040_v48, %v2113_v51 }
 0x12a   : > { %730 = vrot.lane.b32.xlu1 %v728_v33, %s1936_s10  ;;  %1034 = vrot.lane.b32.xlu0 %v1032_v34, %s2775_s13  ;;  %v339_v33 = vmul.f32 %v338_v21, %v337_v23  ;;  %v344_v34 = vmul.f32 %v343_v22, %v342_v26 }
 0x12c   : > { %v345_v47 = vadd.f32 %v344_v34, %v339_v33  ;;  %v1091_v34 = vstv %s2364_s11  ;;  %s1942_s11 = smov 124  }
 0x12e   : > { %1185 = vrot.lane.b32.xlu1 %v1183_v38, %s2774_s29  ;;  %1338 = vrot.lane.b32.xlu0 %v1336_v39, %s2774_s29  ;;  %v614_v20 = vstv %s1635_s25  ;;  %v768_v38 = vmul.f32 %v767_v30, %v2111_v50  ;;  %v1072_v39 = vmul.f32 %v1071_v31, %v2111_v50  ;;  %s2380_s25 = sld [smem:[#allocation5 + $0x5e]] }
 0x12f   : > { %v615_v28 = vmul.f32 %v614_v20, %v2113_v51 }
 0x132   : > { %881 = vrot.lane.b32.xlu1 %v879_v44, %s2775_s13  ;;  %588 = vrot.lane.b32.xlu0 %v586_v45, %s1937_s27  ;;  %v1222_v44 = vstv %s2323_s7  ;;  %v1375_v45 = vstv %s2325_s9  ;;  %s2419_s7 = sld [smem:[#allocation5 + $0x30]]  ;;  %s2421_s9 = sld [smem:[#allocation5 + $0x61]] }
 0x136   : > { %739 = vrot.lane.b32.xlu1 %v737_v49, %s1936_s10  ;;  %1043 = vrot.lane.b32.xlu0 %v1041_v52, %s2775_s13  ;;  %v918_v49 = vstv %s2329_s12  ;;  %s2431_s12 = sld [smem:[#allocation5 + $0x1c]] }
 0x13a   : > { %1196 = vrot.lane.b32.xlu1 %v1194_v56, %s2775_s13  ;;  %1347 = vrot.lane.b32.xlu0 %v1345_v57, %s2774_s29  ;;  %s1673_s29 = sld [smem:[#allocation5 + $0x51]]  ;;  %v1223_v56 = vmul.f32 %v1222_v44, %v2113_v51  ;;  %v1376_v57 = vmul.f32 %v1375_v45, %v2111_v50 }
 0x13e   : > { %892 = vrot.lane.b32.xlu1 %v890_v60, %s1936_s10  ;;  %597 = vrot.lane.b32.xlu0 %v595_v61, %s1937_s27  ;;  %v776_v61 = vstv %s2334_s1  ;;  %s2433_s1 = sld [smem:[#allocation5 + $0x4d]] }
 0x140   : > { %v1060_v11 = vstv %s1673_s29  ;;  %s2356_s29 = sld [smem:[#allocation5 + $0x2d]] }
 0x141   : > { %v1061_v13 = vmul.f32 %v1060_v11, %v2113_v51 }
 0x142   : > { %750 = vrot.lane.b32.xlu1 %v748_v0, %s1937_s27  ;;  %1054 = vrot.lane.b32.xlu0 %v1052_v1, %s1936_s10 }
 0x146   : > { %1205 = vrot.lane.b32.xlu1 %v1203_v4, %s2775_s13  ;;  %1358 = vrot.lane.b32.xlu0 %v1356_v5, %s2775_s13  ;;  %v919_v4 = vmul.f32 %v918_v49, %v2113_v51  ;;  %v777_v5 = vmul.f32 %v776_v61, %v2113_v51  ;;  %v929_v22 = vstv %s2356_s29  ;;  %v1092_v49 = vmul.f32 %v1091_v34, %v2111_v50  ;;  %s2460_s29 = sld [smem:[#allocation5 + $0x5b]] }
 0x147   : > { %v930_v33 = vmul.f32 %v929_v22, %v2111_v50 }
 0x14a   : > { %901 = vrot.lane.b32.xlu1 %v899_v8, %s1936_s10  ;;  %608 = vrot.lane.b32.xlu0 %v606_v9, %s1938_s16  ;;  %v1233_v9 = vstv %s2344_s6  ;;  %s2446_s6 = sld [smem:[#allocation5 + $0x54]] }
 0x14e   : > { %759 = vrot.lane.b32.xlu1 %v757_v12, %s1937_s27  ;;  %1063 = vrot.lane.b32.xlu0 %v1061_v13, %s1936_s10 }
 0x152   : > { %1216 = vrot.lane.b32.xlu1 %v1214_v17, %s1936_s10  ;;  %1367 = vrot.lane.b32.xlu0 %v1365_v18, %s2775_s13  ;;  %s2338_s13 = sld [smem:[#allocation5 + $0x58]]  ;;  %v1234_v17 = vmul.f32 %v1233_v9, %v2111_v50  ;;  %v1384_v18 = vstv %s2352_s30  ;;  %s2458_s30 = sld [smem:[#allocation5 + $0x2a]] }
 0x153   : > { %v1385_v31 = vmul.f32 %v1384_v18, %v2113_v51 }
 0x156   : > { %912 = vrot.lane.b32.xlu1 %v910_v27, %s1937_s27  ;;  %617 = vrot.lane.b32.xlu0 %v615_v28, %s1938_s16 }
 0x158   : > { %v364_v35 = vpop.permute.xlu1 %363  ;;  %v353_v37 = vpop.permute.xlu0 %352  ;;  %v1080_v0 = vstv %s2338_s13  ;;  %s2444_s13 = sld [smem:[#allocation5 + $0x23]] }
 0x159   : > { %v365_v42 = vrot.slane %v364_v35, 1  ;;  %v354_v43 = vrot.slane %v353_v37, 1  ;;  %v1081_v16 = vmul.f32 %v1080_v0, %v2113_v51 }
 0x15a   : > { %770 = vrot.lane.b32.xlu1 %v768_v38, %s1938_s16  ;;  %1074 = vrot.lane.b32.xlu0 %v1072_v39, %s1937_s27  ;;  %v1242_v39 = vstv %s2368_s14  ;;  %s1943_s14 = smov 123  }
 0x15b   : > { %v356_v48 = vsel %vm355_vm10, %v353_v37, %v354_v43  ;;  %v366_v58 = vsel %vm355_vm10, %v364_v35, %v365_v42 }
 0x15c   : > { %v358_v52 = vadd.f32 %v356_v48, %v345_v47  ;;  %v375_v53 = vpop.permute.xlu1 %374  ;;  %v385_v54 = vpop.permute.xlu0 %384 }
 0x15d   : > { %v376_v59 = vrot.slane %v375_v53, 1  ;;  %v386_v60 = vrot.slane %v385_v54, 1 }
 0x15e   : > { %v368_v62 = vadd.f32 %v366_v58, %v358_v52  ;;  %1225 = vrot.lane.b32.xlu1 %v1223_v56, %s1936_s10  ;;  %1378 = vrot.lane.b32.xlu0 %v1376_v57, %s1936_s10  ;;  %v1243_v52 = vmul.f32 %v1242_v39, %v2113_v51  ;;  %v1395_v56 = vstv %s2378_s15  ;;  %v938_v57 = vstv %s2380_s25  ;;  %s1944_s15 = smov 122   ;;  %s1608_s25 = sld [smem:[#allocation5 + $0x62]] }
 0x15f   : > { %v378_v63 = vsel %vm377_vm11, %v375_v53, %v376_v59  ;;  %v387_v6 = vsel %vm377_vm11, %v385_v54, %v386_v60  ;;  %v939_v0 = vmul.f32 %v938_v57, %v2113_v51 }
 0x160   : > { %v380_v1 = vadd.f32 %v378_v63, %v368_v62  ;;  %v396_v2 = vpop.permute.xlu1 %395  ;;  %v406_v3 = vpop.permute.xlu0 %405  ;;  %v1396_v63 = vmul.f32 %v1395_v56, %v2111_v50 }
 0x161   : > { %v397_v7 = vrot.slane %v396_v2, 1  ;;  %v407_v8 = vrot.slane %v406_v3, 1 }
 0x162   : > { %v389_v10 = vadd.f32 %v387_v6, %v380_v1  ;;  %921 = vrot.lane.b32.xlu1 %v919_v4, %s1937_s27  ;;  %779 = vrot.lane.b32.xlu0 %v777_v5, %s1938_s16  ;;  %v1253_v4 = vstv %s2395_s18  ;;  %s1714_s18 = sshll.u32 %s1918_s22, 5  ;;  %s1503_s22 = scalar_lea.sflag [#allocation8], %s2084_s8 }
 0x163   : > { %v399_v11 = vsel %vm398_vm12, %v396_v2, %v397_v7  ;;  %v408_v19 = vsel %vm398_vm12, %v406_v3, %v407_v8  ;;  %v1100_v3 = vstv %s2393_s17  ;;  %s1607_s17 = sshll.u32 %s2084_s8, 1 }
 0x164   : > { %v401_v12 = vadd.f32 %v399_v11, %v389_v10  ;;  %v509_v13 = vpop.permute.xlu1 %508  ;;  %v518_v14 = vpop.permute.xlu0 %517  ;;  %v1101_v10 = vmul.f32 %v1100_v3, %v2113_v51  ;;  %v1254_v11 = vmul.f32 %v1253_v4, %v2111_v50  ;;  %v455_v4 = vstv %s2458_s30 }
 0x165   : > { %v510_v20 = vrot.slane %v509_v13, 1  ;;  %v519_v21 = vrot.slane %v518_v14, 1 }
 0x166   : > { %v2382_v23 = vadd.f32 %v408_v19, %v401_v12  ;;  %1083 = vrot.lane.b32.xlu1 %v1081_v16, %s1937_s27  ;;  %1236 = vrot.lane.b32.xlu0 %v1234_v17, %s1937_s27  ;;  %v1262_v16 = vstv %s2408_s28 }
 0x167   : > { %v511_v26 = vsel %vm355_vm10, %v509_v13, %v510_v20  ;;  %v520_v35 = vsel %vm355_vm10, %v518_v14, %v519_v21  ;;  %v1404_v14 = vstv %s2406_s0  ;;  %s153_s0 = scalar_lea.vmem [#allocation9], %s1607_s17 }
 0x168   : > { %v513_v27 = vadd.f32 %v511_v26, %v2200_v24  ;;  %v671_v28 = vpop.permute.xlu1 %670  ;;  %v529_v30 = vpop.permute.xlu0 %528  ;;  %v1405_v26 = vmul.f32 %v1404_v14, %v2113_v51  ;;  %s1517_s28 = sshll.u32 %s153_s0, 4  ;;  %s2706_s28 = int_to_ptr.vmem [resolvable:$true] %s1517_s28 }
 0x169   : > { %v672_v37 = vrot.slane %v671_v28, 1  ;;  %v530_v38 = vrot.slane %v529_v30, 1 }
 0x16a   : > { %v522_v42 = vadd.f32 %v520_v35, %v513_v27  ;;  %1387 = vrot.lane.b32.xlu1 %v1385_v31, %s1936_s10  ;;  %932 = vrot.lane.b32.xlu0 %v930_v33, %s1938_s16  ;;  %v1263_v27 = vmul.f32 %v1262_v16, %v2113_v51  ;;  %v1415_v31 = vstv %s2419_s7  ;;  %v1424_v33 = vstv %s2421_s9 }
 0x16b   : > { %v673_v24 = vsel %vm355_vm10, %v671_v28, %v672_v37  ;;  %v531_v43 = vsel %vm377_vm11, %v529_v30, %v530_v38 }
 0x16c   : > { %v675_v44 = vadd.f32 %v673_v24, %v2209_v29  ;;  %v533_v45 = vadd.f32 %v531_v43, %v522_v42  ;;  %v680_v47 = vpop.permute.xlu1 %679  ;;  %v833_v48 = vpop.permute.xlu0 %832  ;;  %v1416_v42 = vmul.f32 %v1415_v31, %v2111_v50  ;;  %v1425_v24 = vmul.f32 %v1424_v33, %v2113_v51 }
 0x16d   : > { %v681_v53 = vrot.slane %v680_v47, 1  ;;  %v834_v54 = vrot.slane %v833_v48, 1 }
 0x16e   : > { %1094 = vrot.lane.b32.xlu1 %v1092_v49, %s1938_s16  ;;  %1245 = vrot.lane.b32.xlu0 %v1243_v52, %s1937_s27 }
 0x16f   : > { %v682_v29 = vsel %vm355_vm10, %v680_v47, %v681_v53  ;;  %v835_v58 = vsel %vm355_vm10, %v833_v48, %v834_v54  ;;  %v423_v47 = vstv %s2433_s1  ;;  %s1842_s1 = scalar_lea.vmem %s2706_s28, 32 }
 0x170   : > { %v684_v59 = vadd.f32 %v682_v29, %v675_v44  ;;  %v837_v60 = vadd.f32 %v835_v58, %v2215_v32  ;;  %v538_v61 = vpop.permute.xlu1 %537  ;;  %v691_v62 = vpop.permute.xlu0 %690  ;;  %v424_v29 = vmul.f32 %v423_v47, %v2113_v51  ;;  %p1843_p11 = scmp.ne.s32.totalorder %s2706_s28, %s1842_s1 }
 0x171   : > { %v539_v1 = vrot.slane %v538_v61, 1  ;;  %v692_v2 = vrot.slane %v691_v62, 1 }
 0x172   : > { %1398 = vrot.lane.b32.xlu1 %v1396_v63, %s1937_s27  ;;  %941 = vrot.lane.b32.xlu0 %v939_v0, %s1938_s16  ;;  %p1844_p0 = pnand %p1843_p11, %p2776_p12 }
 0x173   : > { %v540_v32 = vsel %vm377_vm11, %v538_v61, %v539_v1  ;;  %v693_v5 = vsel %vm377_vm11, %v691_v62, %v692_v2 }
 0x174   : > { %v542_v6 = vadd.f32 %v540_v32, %v533_v45  ;;  %v695_v7 = vadd.f32 %v693_v5, %v684_v59  ;;  %v995_v8 = vpop.permute.xlu1 %994  ;;  %v842_v9 = vpop.permute.xlu0 %841  ;;  %v413_v45 = vstv %s2431_s12  ;;  %v434_v59 = vstv %s2444_s13  ;;  %s2704_s12 = scalar_lea.hbm %s2757_s2, %s1714_s18  ;;  %p1845_p3 = pneg %p1844_p0 }
 0x175   : > { %v996_v12 = vrot.slane %v995_v8, 1  ;;  %v843_v13 = vrot.slane %v842_v9, 1  ;;  %v414_v57 = vmul.f32 %v413_v45, %v2111_v50  ;;  %v435_v0 = vmul.f32 %v434_v59, %v2111_v50  ;;  %s1945_s13 = smov [#allocation9]  }
 0x176   : > { %1103 = vrot.lane.b32.xlu1 %v1101_v10, %s1938_s16  ;;  %1256 = vrot.lane.b32.xlu0 %v1254_v11, %s1938_s16  ;;  %v465_v32 = vstv %s2460_s29  ;;  %v456_v11 = vmul.f32 %v455_v4, %v2111_v50 }
 0x177   : > { %v997_v17 = vsel %vm355_vm10, %v995_v8, %v996_v12  ;;  %v844_v18 = vsel %vm355_vm10, %v842_v9, %v843_v13  ;;  %v466_v12 = vmul.f32 %v465_v32, %v2113_v51 }
 0x178   : > { %v999_v19 = vadd.f32 %v997_v17, %v2223_v40  ;;  %v846_v20 = vadd.f32 %v844_v18, %v837_v60  ;;  %v549_v21 = vpop.permute.xlu1 %548  ;;  %v700_v22 = vpop.permute.xlu0 %699  ;;  %v444_v60 = vstv %s2446_s6  ;;  %s1846_s6 = sshll.u32 %s1945_s13, 4  ;;  %s1847_s6 = int_to_ptr.vmem [resolvable:$false] %s1846_s6 }
 0x179   : > { %v550_v28 = vrot.slane %v549_v21, 1  ;;  %v701_v30 = vrot.slane %v700_v22, 1  ;;  %v445_v1 = vmul.f32 %v444_v60, %v2113_v51  ;;  %s1848_s30 = scalar_lea.vmem %s1847_s6, 64  ;;  %p1849_p10 = scmp.lt.s32.totalorder %s2706_s28, %s1847_s6 }
 0x17a   : > { %1407 = vrot.lane.b32.xlu1 %v1405_v26, %s1937_s27  ;;  %1265 = vrot.lane.b32.xlu0 %v1263_v27, %s1938_s16  ;;  %p1850_p2 = scmp.lt.s32.totalorder %s1848_s30, %s1842_s1 }
 0x17b   : > { %v551_v40 = vsel %vm398_vm12, %v549_v21, %v550_v28  ;;  %v702_v34 = vsel %vm377_vm11, %v700_v22, %v701_v30 }
 0x17c   : > { %v2452_v35 = vadd.f32 %v551_v40, %v542_v6  ;;  %v704_v37 = vadd.f32 %v702_v34, %v695_v7  ;;  %v1004_v38 = vpop.permute.xlu1 %1003  ;;  %v1157_v39 = vpop.permute.xlu0 %1156  ;;  %p1851_p6 = por %p1850_p2, %p1849_p10 }
 0x17d   : > { %v1005_v43 = vrot.slane %v1004_v38, 1  ;;  %v1158_v44 = vrot.slane %v1157_v39, 1 }
 0x17e   : > { %1418 = vrot.lane.b32.xlu1 %v1416_v42, %s1938_s16  ;;  %1427 = vrot.lane.b32.xlu0 %v1425_v24, %s1938_s16  ;;  %p1852_p9 = pnand %p1851_p6, %p1845_p3 }
 0x17f   : > { %v1006_v48 = vsel %vm355_vm10, %v1004_v38, %v1005_v43  ;;  %v1159_v49 = vsel %vm355_vm10, %v1157_v39, %v1158_v44 }
 0x180   : > { %v1008_v52 = vadd.f32 %v1006_v48, %v999_v19  ;;  %v1161_v53 = vadd.f32 %v1159_v49, %v2231_v46  ;;  %v853_v54 = vpop.permute.xlu1 %852  ;;  %v2467_v56 = vpop.permute.xlu0 %557 }
 0x181   : > { %v854_v58 = vrot.slane %v853_v54, 1 }
 0x182   : > { %416 = vrot.lane.b32.xlu1 %v414_v57, %s1936_s10  ;;  %426 = vrot.lane.b32.xlu0 %v424_v29, %s1936_s10  ;;  %s1939_s10 = smov 127  }
 0x183   : > { %v855_v61 = vsel %vm377_vm11, %v853_v54, %v854_v58 }
 0x184   : > { %v857_v62 = vadd.f32 %v855_v61, %v846_v20  ;;  %v711_v46 = vpop.permute.xlu1 %710  ;;  %v1015_v63 = vpop.permute.xlu0 %1014 }
 0x185   : > { %v712_v2 = vrot.slane %v711_v46, 1  ;;  %v1016_v3 = vrot.slane %v1015_v63, 1 }
 0x186   : > { %437 = vrot.lane.b32.xlu1 %v435_v0, %s1937_s27  ;;  %447 = vrot.lane.b32.xlu0 %v445_v1, %s1937_s27  ;;  %s1940_s27 = smov 126  }
 0x187   : > { %v713_v5 = vsel %vm398_vm12, %v711_v46, %v712_v2  ;;  %v1017_v6 = vsel %vm377_vm11, %v1015_v63, %v1016_v3 }
 0x188   : > { %v2484_v7 = vadd.f32 %v713_v5, %v704_v37  ;;  %v1019_v8 = vadd.f32 %v1017_v6, %v1008_v52  ;;  %v1166_v9 = vpop.permute.xlu1 %1165  ;;  %v1319_v10 = vpop.permute.xlu0 %1318 }
 0x189   : > { %v1167_v13 = vrot.slane %v1166_v9, 1  ;;  %v1320_v14 = vrot.slane %v1319_v10, 1 }
 0x18a   : > { %458 = vrot.lane.b32.xlu1 %v456_v11, %s1938_s16  ;;  %468 = vrot.lane.b32.xlu0 %v466_v12, %s1938_s16  ;;  %v559_v11 = vrot.slane %v2467_v56, 1  ;;  %s1941_s16 = smov 125  }
 0x18b   : > { %v1168_v16 = vsel %vm355_vm10, %v1166_v9, %v1167_v13  ;;  %v1321_v17 = vsel %vm355_vm10, %v1319_v10, %v1320_v14 }
 0x18c   : > { %v1170_v18 = vadd.f32 %v1168_v16, %v1161_v53  ;;  %v1323_v19 = vadd.f32 %v1321_v17, %v2239_v55  ;;  %v862_v20 = vpop.permute.xlu1 %861  ;;  %v569_v21 = vpop.permute.xlu0 %568  ;;  %v560_v16 = vsel %vm398_vm12, %v2467_v56, %v559_v11 }
 0x18d   : > { %v863_v22 = vrot.slane %v862_v20, 1  ;;  %v570_v12 = vrot.slane %v569_v21, 1 }
 0x18f   : > { %v864_v50 = vsel %vm377_vm11, %v862_v20, %v863_v22  ;;  %v562_v20 = vadd.f32 %v560_v16, %v2452_v35 }
 0x190   : > { %v866_v26 = vadd.f32 %v864_v50, %v857_v62  ;;  %v2494_v51 = vpop.permute.xlu1 %719  ;;  %v1024_v27 = vpop.permute.xlu0 %1023 }
 0x191   : > { %v1025_v28 = vrot.slane %v1024_v27, 1 }
 0x193   : > { %v1026_v30 = vsel %vm377_vm11, %v1024_v27, %v1025_v28 }
 0x194   : > { %v1028_v31 = vadd.f32 %v1026_v30, %v1019_v8  ;;  %v1177_v33 = vpop.permute.xlu1 %1176  ;;  %v1328_v40 = vpop.permute.xlu0 %1327 }
 0x195   : > { %v1178_v34 = vrot.slane %v1177_v33, 1  ;;  %v1329_v37 = vrot.slane %v1328_v40, 1 }
 0x197   : > { %v1179_v38 = vsel %vm377_vm11, %v1177_v33, %v1178_v34  ;;  %v1330_v55 = vsel %vm355_vm10, %v1328_v40, %v1329_v37  ;;  %vm972_vm10 = vcmask 1022976  }
 0x198   : > { %v1181_v39 = vadd.f32 %v1179_v38, %v1170_v18  ;;  %v1332_v42 = vadd.f32 %v1330_v55, %v1323_v19  ;;  %v873_v24 = vpop.permute.xlu1 %872  ;;  %v578_v43 = vpop.permute.xlu0 %577  ;;  %v571_v18 = vsel %vm419_vm13, %v569_v21, %v570_v12  ;;  %v721_v21 = vrot.slane %v2494_v51, 1 }
 0x199   : > { %v874_v44 = vrot.slane %v873_v24, 1  ;;  %v579_v17 = vrot.slane %v578_v43, 1  ;;  %v573_v28 = vadd.f32 %v571_v18, %v562_v20 }
 0x19b   : > { %v875_v45 = vsel %vm398_vm12, %v873_v24, %v874_v44  ;;  %v722_v24 = vsel %vm398_vm12, %v2494_v51, %v721_v21 }
 0x19c   : > { %v2500_v47 = vadd.f32 %v875_v45, %v866_v26  ;;  %v731_v48 = vpop.permute.xlu1 %730  ;;  %v1035_v49 = vpop.permute.xlu0 %1034  ;;  %v580_v26 = vsel %vm419_vm13, %v578_v43, %v579_v17 }
 0x19d   : > { %v1036_v52 = vrot.slane %v1035_v49, 1  ;;  %v582_v33 = vadd.f32 %v580_v26, %v573_v28  ;;  %v732_v37 = vrot.slane %v731_v48, 1 }
 0x19f   : > { %v1037_v53 = vsel %vm398_vm12, %v1035_v49, %v1036_v52  ;;  %v2550_v49 = vsub.s32 1, %v2093_v25  ;;  %v2553_v52 = vsub.s32 0, %v2093_v25 }
 0x1a0   : > { %v2503_v54 = vadd.f32 %v1037_v53, %v1028_v31  ;;  %v1186_v57 = vpop.permute.xlu1 %1185  ;;  %v1339_v29 = vpop.permute.xlu0 %1338  ;;  %v733_v53 = vsel %vm419_vm13, %v731_v48, %v732_v37 }
 0x1a1   : > { %v1187_v58 = vrot.slane %v1186_v57, 1  ;;  %v1340_v59 = vrot.slane %v1339_v29, 1 }
 0x1a3   : > { %v1188_v60 = vsel %vm377_vm11, %v1186_v57, %v1187_v58  ;;  %v1341_v61 = vsel %vm377_vm11, %v1339_v29, %v1340_v59  ;;  %v724_v58 = vadd.f32 %v722_v24, %v2484_v7 }
 0x1a4   : > { %v2507_v62 = vadd.f32 %v1188_v60, %v1181_v39  ;;  %v2509_v46 = vadd.f32 %v1341_v61, %v1332_v42  ;;  %v2511_v63 = vpop.permute.xlu1 %881  ;;  %v589_v0 = vpop.permute.xlu0 %588 }
 0x1a5   : > { %v590_v19 = vrot.slane %v589_v0, 1  ;;  %v883_v28 = vrot.slane %v2511_v63, 1 }
 0x1a7   : > { %v591_v30 = vsel %vm440_vm14, %v589_v0, %v590_v19 }
 0x1a8   : > { %v740_v1 = vpop.permute.xlu1 %739  ;;  %v2513_v2 = vpop.permute.xlu0 %1043  ;;  %v593_v34 = vadd.f32 %v591_v30, %v582_v33 }
 0x1a9   : > { %v741_v43 = vrot.slane %v740_v1, 1  ;;  %v1045_v30 = vrot.slane %v2513_v2, 1 }
 0x1ab   : > { %v742_v51 = vsel %vm419_vm13, %v740_v1, %v741_v43 }
 0x1ac   : > { %v2515_v3 = vpop.permute.xlu1 %1196  ;;  %v2517_v4 = vpop.permute.xlu0 %1347 }
 0x1ad   : > { %v1349_v24 = vrot.slane %v2517_v4, 1 }
 0x1b0   : > { %v2519_v32 = vpop.permute.xlu1 %892  ;;  %v598_v5 = vpop.permute.xlu0 %597 }
 0x1b1   : > { %v599_v27 = vrot.slane %v598_v5, 1  ;;  %v894_v21 = vrot.slane %v2519_v32, 1 }
 0x1b3   : > { %v600_v35 = vsel %vm440_vm14, %v598_v5, %v599_v27  ;;  %v735_v5 = vadd.f32 %v733_v53, %v724_v58 }
 0x1b4   : > { %v751_v6 = vpop.permute.xlu1 %750  ;;  %v2521_v8 = vpop.permute.xlu0 %1054  ;;  %v602_v55 = vadd.f32 %v600_v35, %v593_v34 }
 0x1b5   : > { %v752_v57 = vrot.slane %v751_v6, 1  ;;  %v744_v17 = vadd.f32 %v742_v51, %v735_v5 }
 0x1b7   : > { %v753_v48 = vsel %vm440_vm14, %v751_v6, %v752_v57 }
 0x1b8   : > { %v2523_v9 = vpop.permute.xlu1 %1205  ;;  %v2525_v10 = vpop.permute.xlu0 %1358  ;;  %v755_v19 = vadd.f32 %v753_v48, %v744_v17 }
 0x1bc   : > { %v2528_v13 = vpop.permute.xlu1 %901  ;;  %v609_v14 = vpop.permute.xlu0 %608 }
 0x1bd   : > { %v610_v31 = vrot.slane %v609_v14, 1  ;;  %v903_v43 = vrot.slane %v2528_v13, 1 }
 0x1bf   : > { %v611_v38 = vsel %vm461_vm15, %v609_v14, %v610_v31  ;;  %v2564_v14 = vsub.s32 2, %v2093_v25  ;;  %v904_v5 = vsel %vm419_vm13, %v2528_v13, %v903_v43 }
 0x1c0   : > { %v760_v22 = vpop.permute.xlu1 %759  ;;  %v2534_v50 = vpop.permute.xlu0 %1063  ;;  %v613_v45 = vadd.f32 %v611_v38, %v602_v55  ;;  %v884_v55 = vsel %vm398_vm12, %v2511_v63, %v883_v28 }
 0x1c1   : > { %v761_v0 = vrot.slane %v760_v22, 1  ;;  %v886_v58 = vadd.f32 %v884_v55, %v2500_v47  ;;  %v1065_v47 = vrot.slane %v2534_v50, 1 }
 0x1c3   : > { %v762_v1 = vsel %vm440_vm14, %v760_v22, %v761_v0  ;;  %v1198_v22 = vrot.slane %v2515_v3, 1 }
 0x1c4   : > { %v2538_v56 = vpop.permute.xlu1 %1216  ;;  %v2540_v40 = vpop.permute.xlu0 %1367  ;;  %v764_v25 = vadd.f32 %v762_v1, %v755_v19 }
 0x1c8   : > { %v2545_v39 = vpop.permute.xlu1 %912  ;;  %v618_v42 = vpop.permute.xlu0 %617 }
 0x1c9   : > { %v619_v44 = vrot.slane %v618_v42, 1  ;;  %v914_v63 = vrot.slane %v2545_v39, 1 }
 0x1cb   : > { %v620_v29 = vsel %vm461_vm15, %v618_v42, %v619_v44  ;;  %v1046_v42 = vsel %vm398_vm12, %v2513_v2, %v1045_v30  ;;  %v1056_v44 = vrot.slane %v2521_v8, 1 }
 0x1cc   : > { %v622_v59 = vadd.f32 %v620_v29, %v613_v45  ;;  %v771_v60 = vpop.permute.xlu1 %770  ;;  %v2558_v61 = vpop.permute.xlu0 %1074  ;;  %v1207_v45 = vrot.slane %v2523_v9, 1  ;;  %v895_v29 = vsel %vm419_vm13, %v2519_v32, %v894_v21  ;;  %v1048_v2 = vadd.f32 %v1046_v42, %v2503_v54 }
 0x1cd   : > { %v772_v16 = vrot.slane %v771_v60, 1  ;;  %v1350_v32 = vsel %vm377_vm11, %v2517_v4, %v1349_v24  ;;  %v915_v4 = vsel %vm440_vm14, %v2545_v39, %v914_v63  ;;  %v1076_v17 = vrot.slane %v2558_v61, 1 }
 0x1ce   : > { %v637_v11 = vrot.slane %v622_v59, %v2550_v49  ;;  %v633_v12 = vrot.slane %v622_v59, %v2553_v52  ;;  %v641_v20 = vrot.slane %v622_v59, %v2564_v14  ;;  %v1199_v59 = vsel %vm398_vm12, %v2515_v3, %v1198_v22 }
 0x1cf   : > { %v773_v26 = vsel %vm461_vm15, %v771_v60, %v772_v16  ;;  %v1360_v60 = vrot.slane %v2525_v10, 1  ;;  %v1057_v3 = vsel %vm419_vm13, %v2521_v8, %v1056_v44  ;;  %v1218_v16 = vrot.slane %v2538_v56, 1 }
 0x1d0   : > { %v2567_v7 = vpop.permute.xlu1 %1225  ;;  %644 = vrot.lane.b32.xlu0 %v637_v11, %s1939_s10  ;;  %642 = vrot.lane.b32.xlu1 %v633_v12, %s1939_s10  ;;  %v2569_v18 = vpop.permute.xlu0 %1378  ;;  %v775_v33 = vadd.f32 %v773_v26, %v764_v25  ;;  %v897_v11 = vadd.f32 %v895_v29, %v886_v58  ;;  %v1208_v12 = vsel %vm398_vm12, %v2523_v9, %v1207_v45 }
 0x1d1   : > { %v1201_v1 = vadd.f32 %v1199_v59, %v2507_v62  ;;  %v1352_v19 = vadd.f32 %v1350_v32, %v2509_v46  ;;  %v1361_v8 = vsel %vm398_vm12, %v2525_v10, %v1360_v60  ;;  %v1066_v25 = vsel %vm419_vm13, %v2534_v50, %v1065_v47 }
 0x1d2   : > { %v1059_v30 = vadd.f32 %v1057_v3, %v1048_v2  ;;  %v1227_v46 = vrot.slane %v2567_v7, 1  ;;  %v1219_v10 = vsel %vm419_vm13, %v2538_v56, %v1218_v16 }
 0x1d3   : > { %v1363_v50 = vadd.f32 %v1361_v8, %v1352_v19 }
 0x1d4   : > { %v922_v27 = vpop.permute.xlu1 %921  ;;  %646 = vrot.lane.b32.xlu1 %v641_v20, %s1939_s10  ;;  %v780_v6 = vpop.permute.xlu0 %779  ;;  %v906_v20 = vadd.f32 %v904_v5, %v897_v11  ;;  %v1068_v22 = vadd.f32 %v1066_v25, %v1059_v30 }
 0x1d5   : > { %v781_v31 = vrot.slane %v780_v6, 1  ;;  %v923_v54 = vrot.slane %v922_v27, 1 }
 0x1d6   : > { %v917_v62 = vadd.f32 %v915_v4, %v906_v20 }
 0x1d7   : > { %v782_v35 = vsel %vm461_vm15, %v780_v6, %v781_v31  ;;  %v1369_v6 = vrot.slane %v2540_v40, 1  ;;  %v924_v39 = vsel %vm440_vm14, %v922_v27, %v923_v54  ;;  %v1210_v31 = vadd.f32 %v1208_v12, %v1201_v1 }
 0x1d8   : > { %v784_v34 = vadd.f32 %v782_v35, %v775_v33  ;;  %v1084_v37 = vpop.permute.xlu1 %1083  ;;  %v2579_v38 = vpop.permute.xlu0 %1236  ;;  %v1077_v33 = vsel %vm440_vm14, %v2558_v61, %v1076_v17  ;;  %v926_v27 = vadd.f32 %v924_v39, %v917_v62 }
 0x1d9   : > { %v1085_v28 = vrot.slane %v1084_v37, 1  ;;  %v1370_v24 = vsel %vm398_vm12, %v2540_v40, %v1369_v6  ;;  %v1238_v56 = vrot.slane %v2579_v38, 1  ;;  %v1221_v45 = vadd.f32 %v1219_v10, %v1210_v31 }
 0x1da   : > { %v799_v53 = vrot.slane %v784_v34, %v2550_v49  ;;  %v795_v57 = vrot.slane %v784_v34, %v2553_v52  ;;  %v803_v48 = vrot.slane %v784_v34, %v2564_v14  ;;  %v1380_v34 = vrot.slane %v2569_v18, 1 }
 0x1db   : > { %v1086_v43 = vsel %vm440_vm14, %v1084_v37, %v1085_v28  ;;  %v1079_v61 = vadd.f32 %v1077_v33, %v1068_v22  ;;  %v1372_v59 = vadd.f32 %v1370_v24, %v1363_v50  ;;  %v1239_v5 = vsel %vm440_vm14, %v2579_v38, %v1238_v56 }
 0x1dc   : > { %v2599_v51 = vpop.permute.xlu1 %1387  ;;  %806 = vrot.lane.b32.xlu1 %v799_v53, %s1940_s27  ;;  %804 = vrot.lane.b32.xlu0 %v795_v57, %s1940_s27  ;;  %v933_v0 = vpop.permute.xlu0 %932  ;;  %v1228_v53 = vsel %vm419_vm13, %v2567_v7, %v1227_v46  ;;  %v1381_v40 = vsel %vm419_vm13, %v2569_v18, %v1380_v34 }
 0x1dd   : > { %v934_v13 = vrot.slane %v933_v0, 1  ;;  %v1389_v29 = vrot.slane %v2599_v51, 1  ;;  %v1088_v37 = vadd.f32 %v1086_v43, %v1079_v61  ;;  %v1230_v11 = vadd.f32 %v1228_v53, %v1221_v45 }
 0x1de   : > { %v1383_v17 = vadd.f32 %v1381_v40, %v1372_v59 }
 0x1df   : > { %v935_v21 = vsel %vm461_vm15, %v933_v0, %v934_v13  ;;  %v1390_v16 = vsel %vm419_vm13, %v2599_v51, %v1389_v29  ;;  %v1241_v13 = vadd.f32 %v1239_v5, %v1230_v11 }
 0x1e0   : > { %v1095_v26 = vpop.permute.xlu1 %1094  ;;  %808 = vrot.lane.b32.xlu0 %v803_v48, %s1940_s27  ;;  %v1246_v9 = vpop.permute.xlu0 %1245  ;;  %v937_v57 = vadd.f32 %v935_v21, %v926_v27  ;;  %v1392_v6 = vadd.f32 %v1390_v16, %v1383_v17 }
 0x1e1   : > { %v1096_v35 = vrot.slane %v1095_v26, 1  ;;  %v1247_v58 = vrot.slane %v1246_v9, 1 }
 0x1e3   : > { %v1097_v63 = vsel %vm461_vm15, %v1095_v26, %v1096_v35  ;;  %v1248_v18 = vsel %vm440_vm14, %v1246_v9, %v1247_v58 }
 0x1e4   : > { %v1399_v55 = vpop.permute.xlu1 %1398  ;;  %v942_v42 = vpop.permute.xlu0 %941  ;;  %v1099_v3 = vadd.f32 %v1097_v63, %v1088_v37  ;;  %v1250_v51 = vadd.f32 %v1248_v18, %v1241_v13 }
 0x1e5   : > { %v943_v44 = vrot.slane %v942_v42, 1  ;;  %v1400_v7 = vrot.slane %v1399_v55, 1 }
 0x1e7   : > { %v944_v2 = vsel %vm461_vm15, %v942_v42, %v943_v44  ;;  %v1401_v8 = vsel %vm440_vm14, %v1399_v55, %v1400_v7 }
 0x1e8   : > { %v946_v60 = vadd.f32 %v944_v2, %v937_v57  ;;  %v1104_v0 = vpop.permute.xlu1 %1103  ;;  %v1257_v32 = vpop.permute.xlu0 %1256  ;;  %v1403_v31 = vadd.f32 %v1401_v8, %v1392_v6 }
 0x1e9   : > { %v1105_v47 = vrot.slane %v1104_v0, 1  ;;  %v1258_v54 = vrot.slane %v1257_v32, 1 }
 0x1ea   : > { %v961_v12 = vrot.slane %v946_v60, %v2550_v49  ;;  %v957_v48 = vrot.slane %v946_v60, %v2553_v52  ;;  %v965_v39 = vrot.slane %v946_v60, %v2564_v14 }
 0x1eb   : > { %v1106_v4 = vsel %vm461_vm15, %v1104_v0, %v1105_v47  ;;  %v1259_v20 = vsel %vm461_vm15, %v1257_v32, %v1258_v54 }
 0x1ec   : > { %v1108_v1 = vadd.f32 %v1106_v4, %v1099_v3  ;;  %v1408_v38 = vpop.permute.xlu1 %1407  ;;  %968 = vrot.lane.b32.xlu0 %v961_v12, %s1941_s16  ;;  %966 = vrot.lane.b32.xlu1 %v957_v48, %s1941_s16  ;;  %v1266_v19 = vpop.permute.xlu0 %1265  ;;  %v1261_v62 = vadd.f32 %v1259_v20, %v1250_v51 }
 0x1ed   : > { %v1409_v26 = vrot.slane %v1408_v38, 1  ;;  %v1267_v25 = vrot.slane %v1266_v19, 1 }
 0x1ee   : > { %v1119_v9 = vrot.slane %v1108_v1, %v2553_v52  ;;  %v1127_v22 = vrot.slane %v1108_v1, %v2564_v14  ;;  %v1123_v34 = vrot.slane %v1108_v1, %v2550_v49 }
 0x1ef   : > { %v1410_v28 = vsel %vm440_vm14, %v1408_v38, %v1409_v26  ;;  %v1268_v30 = vsel %vm461_vm15, %v1266_v19, %v1267_v25 }
 0x1f0   : > { %v1419_v46 = vpop.permute.xlu1 %1418  ;;  %1128 = vrot.lane.b32.xlu0 %v1119_v9, %s1942_s11  ;;  %970 = vrot.lane.b32.xlu1 %v965_v39, %s1941_s16  ;;  %v1428_v10 = vpop.permute.xlu0 %1427  ;;  %v1412_v35 = vadd.f32 %v1410_v28, %v1403_v31  ;;  %v1270_v50 = vadd.f32 %v1268_v30, %v1261_v62 }
 0x1f1   : > { %v1420_v33 = vrot.slane %v1419_v46, 1  ;;  %v1429_v21 = vrot.slane %v1428_v10, 1 }
 0x1f2   : > { %v1285_v45 = vrot.slane %v1270_v50, %v2550_v49  ;;  %v1281_v57 = vrot.slane %v1270_v50, %v2553_v52  ;;  %v1289_v0 = vrot.slane %v1270_v50, %v2564_v14 }
 0x1f3   : > { %v1421_v27 = vsel %vm461_vm15, %v1419_v46, %v1420_v33  ;;  %v1430_v43 = vsel %vm461_vm15, %v1428_v10, %v1429_v21  ;;  %v334_v46 = vstv %s1608_s25 }
 0x1f4   : > { %v1423_v55 = vadd.f32 %v1421_v27, %v1412_v35  ;;  %v417_v42 = vpop.permute.xlu1 %416  ;;  %1132 = vrot.lane.b32.xlu0 %v1127_v22, %s1942_s11  ;;  %1130 = vrot.lane.b32.xlu1 %v1123_v34, %s1942_s11  ;;  %v427_v24 = vpop.permute.xlu0 %426 }
 0x1f5   : > { %v418_v56 = vrot.slane %v417_v42, 1  ;;  %v428_v44 = vrot.slane %v427_v24, 1 }
 0x1f6   : > { %v1432_v61 = vadd.f32 %v1430_v43, %v1423_v55 }
 0x1f7   : > { %v420_v53 = vsel %vm419_vm13, %v417_v42, %v418_v56  ;;  %v429_v2 = vsel %vm419_vm13, %v427_v24, %v428_v44  ;;  %vm1296_vm13 = vcmask 1006592  }
 0x1f8   : > { %v422_v29 = vadd.f32 %v420_v53, %v2382_v23  ;;  %v438_v63 = vpop.permute.xlu1 %437  ;;  %1292 = vrot.lane.b32.xlu0 %v1285_v45, %s1943_s14  ;;  %v448_v58 = vpop.permute.xlu0 %447  ;;  %1290 = vrot.lane.b32.xlu1 %v1281_v57, %s1943_s14  ;;  %v1443_v37 = vrot.slane %v1432_v61, %v2553_v52  ;;  %v1451_v3 = vrot.slane %v1432_v61, %v2564_v14  ;;  %v307_v14 = vand.u32 127, %v197_v15 }
 0x1f9   : > { %v439_v59 = vrot.slane %v438_v63, 1  ;;  %v449_v40 = vrot.slane %v448_v58, 1  ;;  %v1447_v48 = vrot.slane %v1432_v61, %v2550_v49 }
 0x1fa   : > { %v431_v60 = vadd.f32 %v429_v2, %v422_v29  ;;  %v308_v6 = vadd.s32 128, %v307_v14  ;;  %v2675_v39 = vand.u32 15, %v307_v14 }
 0x1fb   : > { %v441_v32 = vsel %vm440_vm14, %v438_v63, %v439_v59  ;;  %v450_v47 = vsel %vm440_vm14, %v448_v58, %v449_v40 }
 0x1fc   : > { %v443_v5 = vadd.f32 %v441_v32, %v431_v60  ;;  %v459_v7 = vpop.permute.xlu1 %458  ;;  %1452 = vrot.lane.b32.xlu0 %v1443_v37, %s1944_s15  ;;  %v469_v23 = vpop.permute.xlu0 %468  ;;  %1294 = vrot.lane.b32.xlu1 %v1289_v0, %s1943_s14  ;;  %v2677_v28 = vand.u32 15, %v308_v6  ;;  %vm474_vm1 = vcmp.ge.s32.totalorder %v2675_v39, 3  ;;  %vm623_vm5 = vcmp.ge.s32.totalorder %v2675_v39, 2 }
 0x1fd   : > { %v460_v54 = vrot.slane %v459_v7, 1  ;;  %v470_v11 = vrot.slane %v469_v23, 1  ;;  %vm785_vm7 = vcmp.ge.s32.totalorder %v2675_v39, 1  ;;  %vm1111_vm11 = vcmp.lt.s32.totalorder %v2675_v39, 15 }
 0x1fe   : > { %v452_v12 = vadd.f32 %v450_v47, %v443_v5  ;;  %vm475_vm2 = vcmp.ge.s32.totalorder %v2677_v28, 3  ;;  %vm624_vm6 = vcmp.ge.s32.totalorder %v2677_v28, 2  ;;  %vm786_vm8 = vcmp.ge.s32.totalorder %v2677_v28, 1 }
 0x1ff   : > { %v462_v16 = vsel %vm461_vm15, %v459_v7, %v460_v54  ;;  %v471_v4 = vsel %vm461_vm15, %v469_v23, %v470_v11  ;;  %vm1112_vm12 = vcmp.lt.s32.totalorder %v2677_v28, 15  ;;  %vm1273_vm14 = vcmp.lt.s32.totalorder %v2675_v39, 14 }
 0x200   : > { %v464_v18 = vadd.f32 %v462_v16, %v452_v12  ;;  %1456 = vrot.lane.b32.xlu0 %v1451_v3, %s1944_s15  ;;  %1454 = vrot.lane.b32.xlu1 %v1447_v48, %s1944_s15  ;;  %vm1274_vm15 = vcmp.lt.s32.totalorder %v2677_v28, 14 }
 0x202   : > { %v473_v17 = vadd.f32 %v471_v4, %v464_v18 }
 0x204   : > { %v484_v13 = vrot.slane %v473_v17, %v2553_v52  ;;  %v488_v1 = vrot.slane %v473_v17, %v2550_v49 }
 0x206   : > { %v491_v10 = vsel %vm474_vm1, %v484_v13, 0.0  ;;  %v492_v33 = vsel %vm475_vm2, %v488_v1, 0.0  ;;  %vm1435_vm1 = vcmp.lt.s32.totalorder %v2675_v39, 13  ;;  %vm1436_vm2 = vcmp.lt.s32.totalorder %v2677_v28, 13 }
 0x207   : > { %v493_v34 = vadd.f32 %v491_v10, %v334_v46  ;;  %v494_v27 = vadd.f32 %v492_v33, %v334_v46 }
 0x242   : > { %v643_v38 = vpop.permute.xlu1 %642  ;;  %v645_v19 = vpop.permute.xlu0 %644 }
 0x243   : > { %v649_v15 = vsel %vm648_vm0, %v643_v38, %v645_v19 }
 0x244   : > { %v653_v50 = vsel %vm623_vm5, %v649_v15, 0.0 }
 0x245   : > { %v655_v56 = vadd.f32 %v653_v50, %v493_v34 }
 0x246   : > { %v647_v20 = vpop.permute.xlu1 %646 }
 0x247   : > { %v650_v49 = vsel %vm648_vm0, %v645_v19, %v647_v20  ;;  %vm1458_vm0 = vcmask 998400  }
 0x248   : > { %v654_v22 = vsel %vm624_vm6, %v650_v49, 0.0 }
 0x249   : > { %v656_v44 = vadd.f32 %v654_v22, %v494_v27 }
 0x24e   : > { %v805_v8 = vpop.permute.xlu0 %804  ;;  %v807_v26 = vpop.permute.xlu1 %806 }
 0x24f   : > { %v811_v21 = vsel %vm810_vm4, %v805_v8, %v807_v26 }
 0x250   : > { %v815_v42 = vsel %vm785_vm7, %v811_v21, 0.0 }
 0x251   : > { %v817_v29 = vadd.f32 %v815_v42, %v655_v56 }
 0x252   : > { %v809_v25 = vpop.permute.xlu0 %808 }
 0x253   : > { %v812_v35 = vsel %vm810_vm4, %v807_v26, %v809_v25 }
 0x254   : > { %v816_v24 = vsel %vm786_vm8, %v812_v35, 0.0 }
 0x255   : > { %v818_v63 = vadd.f32 %v816_v24, %v656_v44 }
 0x25e   : > { %v967_v51 = vpop.permute.xlu1 %966  ;;  %v969_v9 = vpop.permute.xlu0 %968 }
 0x25f   : > { %v973_v53 = vsel %vm972_vm10, %v967_v51, %v969_v9 }
 0x260   : > { %v979_v60 = vadd.f32 %v973_v53, %v817_v29 }
 0x262   : > { %v971_v30 = vpop.permute.xlu1 %970  ;;  %v1129_v52 = vpop.permute.xlu0 %1128 }
 0x263   : > { %v974_v57 = vsel %vm972_vm10, %v969_v9, %v971_v30 }
 0x264   : > { %v980_v0 = vadd.f32 %v974_v57, %v818_v63 }
 0x266   : > { %v1131_v31 = vpop.permute.xlu1 %1130  ;;  %v1133_v62 = vpop.permute.xlu0 %1132 }
 0x267   : > { %v1135_v45 = vsel %vm1134_vm9, %v1129_v52, %v1131_v31  ;;  %v1136_v61 = vsel %vm1134_vm9, %v1131_v31, %v1133_v62 }
 0x268   : > { %v1139_v59 = vsel %vm1111_vm11, %v1135_v45, 0.0  ;;  %v1140_v40 = vsel %vm1112_vm12, %v1136_v61, 0.0 }
 0x269   : > { %v1141_v23 = vadd.f32 %v1139_v59, %v979_v60  ;;  %v1142_v47 = vadd.f32 %v1140_v40, %v980_v0 }
 0x26a   : > { %v1293_v55 = vpop.permute.xlu0 %1292  ;;  %v1291_v43 = vpop.permute.xlu1 %1290 }
 0x26b   : > { %v1297_v58 = vsel %vm1296_vm13, %v1291_v43, %v1293_v55 }
 0x26c   : > { %v1301_v5 = vsel %vm1273_vm14, %v1297_v58, 0.0 }
 0x26d   : > { %v1303_v3 = vadd.f32 %v1301_v5, %v1141_v23 }
 0x26e   : > { %v1453_v2 = vpop.permute.xlu0 %1452  ;;  %v1295_v37 = vpop.permute.xlu1 %1294 }
 0x26f   : > { %v1298_v32 = vsel %vm1296_vm13, %v1293_v55, %v1295_v37 }
 0x270   : > { %v1302_v7 = vsel %vm1274_vm15, %v1298_v32, 0.0 }
 0x271   : > { %v1304_v12 = vadd.f32 %v1302_v7, %v1142_v47 }
 0x272   : > { %v1457_v54 = vpop.permute.xlu0 %1456  ;;  %v1455_v11 = vpop.permute.xlu1 %1454 }
 0x273   : > { %v1459_v48 = vsel %vm1458_vm0, %v1453_v2, %v1455_v11  ;;  %v1460_v16 = vsel %vm1458_vm0, %v1455_v11, %v1457_v54 }
 0x274   : > { %v1463_v18 = vsel %vm1435_vm1, %v1459_v48, 0.0  ;;  %v1464_v4 = vsel %vm1436_vm2, %v1460_v16, 0.0 }
 0x275   : > { %v1465_v17 = vadd.f32 %v1463_v18, %v1303_v3  ;;  %v1466_v13 = vadd.f32 %v1464_v4, %v1304_v12 }
 0x277   : > { %v1706_v1 = vmul.f32 -1.442695, %v1465_v17  ;;  %v1707_v38 = vmul.f32 -1.442695, %v1466_v13 }
 0x279   : > { %1794 = vpow2.f32 %v1706_v1 }
 0x27a   : > { %1796 = vpow2.f32 %v1707_v38 }
 0x283   : > { %v1795_v19 = vpop.eup %1794 }
 0x284   : > { %v1797_v8 = vpop.eup %1796  ;;  %v1473_v20 = vadd.f32 1.0, %v1795_v19 }
 0x285   : > { %v1474_v14 = vadd.f32 1.0, %v1797_v8 }
 0x286   : > { %1798 = vrcp.f32 %v1473_v20 }
 0x287   : > { %1800 = vrcp.f32 %v1474_v14 }
 0x290   : > { %v1799_v26 = vpop.eup %1798 }
 0x291   : > { %v1801_v25 = vpop.eup %1800 }
 0x292   : > { %v1481_v6 = vcombine.low %v1799_v26, %v1801_v25 }
 0x294   : > { %v1488_v51 = vrot.slane %v1481_v6, %v2096_v36 }
 0x296   : > { %v1495_v9 = vrot.slane %v1488_v51, %v2096_v36 }
 0x298   : > { %1501 = vst.msk [vmem:[%s153_s0] sm:$0x3] %vm2101_vm3, %v1495_v9 }
 0x299   : > { %1855 = shalt.err (!%p1852_p9)
}
 0x29a   : > { %s1856_s8 = scalar_lea.hbm %s2704_s12, 32  ;;  %s1860_s27 = scalar_lea.hbm %s2757_s2, 64 }
 0x29b   : > { %p1857_p7 = scmp.ne.s32.totalorder %s2704_s12, %s1856_s8  ;;  %p1861_p4 = scmp.lt.u32.totalorder %s2704_s12, %s2757_s2 }
 0x29c   : > { %p1862_p5 = scmp.lt.u32.totalorder %s1860_s27, %s1856_s8  ;;  %p1864_p11 = scmp.lt.u32.totalorder %s1856_s8, %s2704_s12 }
 0x29d   : > { %p1858_p13 = pnand %p1857_p7, %p2776_p12 }
 0x29e   : > { %p1863_p8 = por %p1862_p5, %p1861_p4 }
 0x29f   : > { %p1859_p1 = pneg %p1858_p13 }
 0x2a0   : > { %p1865_p0 = por %p1864_p11, %p1863_p8 }
 0x2a2   : > { %p1866_p3 = pnand %p1865_p0, %p1859_p1 }
 0x2a4   : > { %1869 = shalt.err (!%p1866_p3)
}
 0x2a5   : > { %1717 = dma.vmem_to_hbm [thread:$0]  (%p2776_p12), %s2706_s28, 32, %s2704_s12, %s1503_s22  }
 0x2a6 PF: > { %s1529_s14 = sand.u32 1, %s1906_s19   ;;  %p2777_p10 = scmp.ne.s32.totalorder %s2767_s5, 0 }
 0x2a7   : > { %p2778_p2 = scmp.ge.s32.totalorder %s1926_s24, 2  ;;  %s1530_s15 = scalar_lea.sflag [#allocation8], %s1529_s14 }
 0x2a9   : > { %p1724_p6 = pnand %p2778_p2, %p2777_p10 }
 0x2ab   : > { %1901 = dma.done.wait (!%p1724_p6), %s1530_s15, 32  }
 0x2ac   : > { %1903 = vsyncadd (!%p1724_p6), %s1530_s15, 4294967264  ;;  %s22_s24 = sadd.s32 1, %s1926_s24   ;;  %s2779_s19 = smov %s1910_s20 }
 0x2ad   : > { %p19_p9 = scmp.ge.s32.totalorder %s22_s24, 4   ;;  %s2780_s20 = smov %s1914_s21 }
 0x2ae   : > { %s2781_s21 = smov %s2029_s4  ;;  %s2782_s22 = smov %s1922_s23 }
 0x2af   : > { %s2783_s23 = smov %s2785_s26  ;;  %21 = sbr.rel (!%p19_p9) target bundleno = 18 (0x12), region = 84 }
 0x2b6   :  { %1535 = vsyncpa [#allocation7], 1 }
 0x2b7   :  { %1537 = vsyncpa [#allocation7 + $0x1], 1 }
 0x2b8   :  { %1538 = vsyncpa [#allocation8], 1 }
 0x2b9   :  { %1540 = vsyncpa [#allocation8 + $0x1], 1 }

</bundles_post_ra>
